<compile_context>
chip_gen: v5e
topology: v5e:2x2
jax: 0.10.0
libtpu: 0.0.40
codegen_flags: <defaults>
</compile_context>

<pallas_src>
import jax
import jax.numpy as jnp
from jax.experimental import pallas as pl
from jax.experimental.pallas import tpu as pltpu

# ---------------- configuration (small synthetic shapes) ----------------
B = 2                  # batch (subjects)
T = 8                  # number of windows / sequence length
C = 4                  # window channels
L = 16                 # window length
IN_FEATS = 1 * C * L   # flattened encoder input per window (= 64)
FEATURE_SIZE = 32      # encoder.feature_size
HIDDEN_DIM = 32        # lstm.hidden_dim (bidirectional => per-direction 16)
H_DIR = HIDDEN_DIM // 2
GATES = 4 * H_DIR      # 64 gate lanes per direction (PyTorch order i, f, g, o)
LANES = 2 * GATES      # 128 = both directions, exactly one vreg width
ATTN_HIDDEN = 128
NUM_CLASSES = 2
GAIN = 0.1

# ---- row offsets inside the single packed parameter slab [SLAB_ROWS, 128] (all 8-aligned) ----
R_WIN = 0                      # fused (enc_w @ W_ih) input projection     [64, 128]
R_WH = R_WIN + IN_FEATS        # block-diagonal recurrent weight           [128, 128]
R_W1A = R_WH + LANES           # attn W1 rows applied to X[i]              [32, 128]
R_W1B = R_W1A + HIDDEN_DIM     # attn W1 rows applied to X[-1]             [32, 128]
R_DW1 = R_W1B + HIDDEN_DIM     # decoder W1 (cols 0:32 real)               [32, 128]
R_DW2 = R_DW1 + HIDDEN_DIM     # decoder W2 (cols 0:2 real)                [32, 128]
R_BIN = R_DW2 + HIDDEN_DIM     # bias block start (8 rows, one (8,128) tile)
SLAB_ROWS = R_BIN + 8          # = 328

VMEM_SPEC = pl.BlockSpec(memory_space=pltpu.MemorySpace.VMEM)


# ---------------- fused encoder + BiLSTM + attention + decoder kernel ----------------
def combined_kernel(x_ref, p_ref, logits_ref):
    f32 = jnp.float32
    # -- static, 8-row-aligned views into the one packed parameter slab --
    w_in = p_ref[R_WIN:R_WIN + IN_FEATS, :]          # [64, 128]
    wh = p_ref[R_WH:R_WH + LANES, :]                 # [128, 128]
    w1a = p_ref[R_W1A:R_W1A + HIDDEN_DIM, :]         # [32, 128]
    w1b = p_ref[R_W1B:R_W1B + HIDDEN_DIM, :]         # [32, 128]
    dw1 = p_ref[R_DW1:R_DW1 + HIDDEN_DIM, :]         # [32, 128]  (cols 0:32 real)
    dw2 = p_ref[R_DW2:R_DW2 + HIDDEN_DIM, :]         # [32, 128]  (cols 0:2 real)
    bias = p_ref[R_BIN:R_BIN + 8, :]                 # all bias rows in one aligned tile
    b_in = bias[0:1, :]                              # fused input-projection bias
    ab1 = bias[1:2, :]                               # attn hidden bias
    aw2 = bias[2:3, :]                               # attn second-layer weight (row)
    db1 = bias[3:4, :]                               # decoder hidden bias (cols 0:32)
    db2 = bias[4:5, :]                               # decoder output bias (cols 0:2)

    # ---- fused encoder + LSTM input projection (encoder Linear folded offline):
    #      one lane-dense [B*T, 64] @ [64, 128] matmul for all 4 gates x 2 directions ----
    x = x_ref[...]                                                    # [B*T, 64] (batch-major)
    proj = jnp.dot(x, w_in, preferred_element_type=f32) + b_in        # [B*T, 128]
    proj = proj.reshape(B, T, LANES)

    # ---- merged bidirectional recurrence ----
    # State h/c is kept a full vreg wide [B, 128]; the real values live on the i-gate lanes
    # {0:16} (fwd) and {64:80} (bwd).  The remaining lanes carry bounded don't-care values that
    # are nulled by the zero rows of `wh` and by mask_f/mask_b below.
    def lstm_step(xg, h, c):
        g = xg + jnp.dot(h, wh, preferred_element_type=f32)           # [B,128]: 1 MXU dot / step
        sig = jax.nn.sigmoid(g)        # full-vreg EUP push: i, f, o gates
        th = jnp.tanh(g)               # full-vreg EUP push: g gate
        # pltpu.roll == jnp.roll: out[l] = in[(l - shift) % 128]; shift (128 - d) fetches lane
        # l + d, aligning the f / g / o gate lanes onto the i-gate (state) lanes.
        f_g = pltpu.roll(sig, LANES - 1 * H_DIR, axis=1)
        g_g = pltpu.roll(th, LANES - 2 * H_DIR, axis=1)
        o_g = pltpu.roll(sig, LANES - 3 * H_DIR, axis=1)
        c_new = f_g * c + sig * g_g    # sig at the state lanes == i gate
        h_new = o_g * jnp.tanh(c_new)
        return h_new, c_new

    h = jnp.zeros((B, LANES), f32)
    c = jnp.zeros((B, LANES), f32)
    hs = [None] * T
    for s in range(T):                 # fully unrolled: fwd consumes time s, bwd time T-1-s
        xg = jnp.concatenate([proj[:, s, :GATES], proj[:, T - 1 - s, GATES:]], axis=-1)
        h, c = lstm_step(xg, h, c)
        hs[s] = h

    # ---- re-align the bwd half to its true timestep; compact to dense [T*B, 32] (time-major) ----
    lane = jax.lax.broadcasted_iota(jnp.int32, (1, LANES), 1)
    mask_f = (lane < H_DIR).astype(f32)
    mask_b = ((lane >= GATES) & (lane < GATES + H_DIR)).astype(f32)
    out128 = jnp.concatenate(
        [hs[t] * mask_f + hs[T - 1 - t] * mask_b for t in range(T)], axis=0)   # [T*B, 128]
    outputs = jnp.concatenate(
        [out128[:, :H_DIR], out128[:, GATES:GATES + H_DIR]], axis=-1)          # [T*B, 32] fwd||bwd
    last = outputs[(T - 1) * B:, :]                                            # [B, 32] == X[-1]

    # ---- attention: attn(cat(X[i], X[-1])) = X[i] @ W1[:32] + X[-1] @ W1[32:] + b1 ----
    proj_all = jnp.dot(outputs, w1a, preferred_element_type=f32)               # [T*B, 128]
    proj_last = jnp.dot(last, w1b, preferred_element_type=f32)                 # [B, 128]
    hid = jnp.maximum(proj_all.reshape(T, B, ATTN_HIDDEN) + proj_last + ab1, 0.0)
    # second attn Linear as broadcast-mult + lane reduce; its scalar bias is dropped:
    # adding one constant to every score is an exact no-op under the softmax below.
    scores = jnp.sum(hid * aw2, axis=-1)                                       # [T, B]

    # F.softmax(weights, dim=0): normalize over the subject/batch dimension (axis 1 here),
    # exactly as written in the PyTorch source.
    m = jnp.max(scores, axis=1, keepdims=True)
    e = jnp.exp(scores - m)
    w = e / jnp.sum(e, axis=1, keepdims=True)                                  # [T, B]

    # torch.bmm(w.unsqueeze(1), outputs).squeeze(): attn_applied[b] = sum_t w[t,b]*outputs[t,b,:]
    attn_applied = jnp.sum(w[:, :, None] * outputs.reshape(T, B, HIDDEN_DIM), axis=0)   # [B, 32]

    # ---- decoder: Linear(32,32) -> ReLU -> Linear(32,2) ----
    h1 = jnp.maximum(jnp.dot(attn_applied, dw1, preferred_element_type=f32) + db1, 0.0)
    h1 = h1[:, :HIDDEN_DIM]                                                    # [B, 32]
    logits = jnp.dot(h1, dw2, preferred_element_type=f32) + db2                # [B, 128]
    logits_ref[...] = logits[:, :NUM_CLASSES]


def combined_call(x_bm, slab):
    return pl.pallas_call(
        combined_kernel,
        out_shape=jax.ShapeDtypeStruct((B, NUM_CLASSES), jnp.float32),
        in_specs=[VMEM_SPEC, VMEM_SPEC],
        out_specs=VMEM_SPEC,
        cost_estimate=pl.CostEstimate(
            flops=1_000_000,
            transcendentals=6_200,
            bytes_accessed=(B * T * IN_FEATS + SLAB_ROWS * LANES + B * NUM_CLASSES) * 4),
    )(x_bm, slab)


@jax.jit
def combined_forward(sx, slab):
    # [B, T, 1, C, L] -> [B*T, IN_FEATS] is a pure (free) reshape: no host-side transpose kernel;
    # the per-timestep reordering happens inside the fused kernel with static slices.
    x_bm = sx.astype(jnp.float32).reshape(B * T, IN_FEATS)
    return combined_call(x_bm, slab)


# ---------------- parameter init (deterministic, synthetic) + slab packing ----------------
def init_param_slab(key):
    ks = jax.random.split(key, 12)

    def xavier(k, shape, gain=GAIN):
        std = gain * (2.0 / (shape[0] + shape[1])) ** 0.5
        return std * jax.random.normal(k, shape, dtype=jnp.float32)

    def unif(k, shape, bound):
        return jax.random.uniform(k, shape, jnp.float32, -bound, bound)

    bnd = 1.0 / (H_DIR ** 0.5)
    # synthetic encoder: Linear(IN_FEATS -> FEATURE_SIZE)
    enc_w = xavier(ks[0], (IN_FEATS, FEATURE_SIZE), gain=1.0)
    enc_b = jnp.zeros((1, FEATURE_SIZE), jnp.float32)
    # synthetic BiLSTM (gate order i,f,g,o), per-direction hidden H_DIR
    wi_f = unif(ks[1], (4, FEATURE_SIZE, H_DIR), bnd)
    wh_f = unif(ks[2], (4, H_DIR, H_DIR), bnd)
    b_f = unif(ks[3], (4, 1, H_DIR), bnd)
    wi_b = unif(ks[4], (4, FEATURE_SIZE, H_DIR), bnd)
    wh_b = unif(ks[5], (4, H_DIR, H_DIR), bnd)
    b_b = unif(ks[6], (4, 1, H_DIR), bnd)

    def pack(wmat, in_dim):   # [4, in, H_DIR] -> [in, 4*H_DIR], gate-major columns
        return jnp.transpose(wmat, (1, 0, 2)).reshape(in_dim, 4 * H_DIR)

    wi = jnp.concatenate([pack(wi_f, FEATURE_SIZE), pack(wi_b, FEATURE_SIZE)], axis=1)  # [32,128]
    bi = jnp.concatenate([pack(b_f, 1), pack(b_b, 1)], axis=1)                          # [1,128]
    # fold the encoder Linear into the LSTM input projection (pure algebra; tiny f32 rounding diff)
    w_in_fused = enc_w @ wi                    # [64, 128]
    b_in_fused = enc_b @ wi + bi               # [1, 128]
    # block-diagonal recurrent weight in the 128-lane state layout
    wh = jnp.zeros((LANES, LANES), jnp.float32)
    wh = wh.at[0:H_DIR, 0:GATES].set(pack(wh_f, H_DIR))
    wh = wh.at[GATES:GATES + H_DIR, GATES:LANES].set(pack(wh_b, H_DIR))
    # attention MLP: Linear(2*HIDDEN_DIM, 128) -> ReLU -> Linear(128, 1)
    w1 = xavier(ks[7], (2 * HIDDEN_DIM, ATTN_HIDDEN))
    ab1 = jnp.zeros((1, ATTN_HIDDEN), jnp.float32)
    aw2 = xavier(ks[8], (ATTN_HIDDEN, 1)).T     # stored as a [1, 128] row
    # attn second-layer scalar bias omitted (cancels exactly in softmax; zero-init here anyway)
    # decoder: Linear(H, H) -> ReLU -> Linear(H, num_classes)
    dw1 = xavier(ks[9], (HIDDEN_DIM, HIDDEN_DIM))
    db1 = jnp.zeros((1, HIDDEN_DIM), jnp.float32)
    dw2 = xavier(ks[10], (HIDDEN_DIM, NUM_CLASSES))
    db2 = jnp.zeros((1, NUM_CLASSES), jnp.float32)
    # classifier1 (Linear(feature_size, hidden_dim)) exists in __init__ but is unused in forward.

    slab = jnp.zeros((SLAB_ROWS, LANES), jnp.float32)
    slab = slab.at[R_WIN:R_WIN + IN_FEATS, :].set(w_in_fused)
    slab = slab.at[R_WH:R_WH + LANES, :].set(wh)
    slab = slab.at[R_W1A:R_W1A + HIDDEN_DIM, :].set(w1[:HIDDEN_DIM])
    slab = slab.at[R_W1B:R_W1B + HIDDEN_DIM, :].set(w1[HIDDEN_DIM:])
    slab = slab.at[R_DW1:R_DW1 + HIDDEN_DIM, 0:HIDDEN_DIM].set(dw1)
    slab = slab.at[R_DW2:R_DW2 + HIDDEN_DIM, 0:NUM_CLASSES].set(dw2)
    slab = slab.at[R_BIN + 0, :].set(b_in_fused[0])
    slab = slab.at[R_BIN + 1, :].set(ab1[0])
    slab = slab.at[R_BIN + 2, :].set(aw2[0])
    slab = slab.at[R_BIN + 3, 0:HIDDEN_DIM].set(db1[0])
    slab = slab.at[R_BIN + 4, 0:NUM_CLASSES].set(db2[0])
    return slab


if __name__ == "__main__":
    key = jax.random.PRNGKey(0)
    k_sx, k_par = jax.random.split(key)
    sx = jax.random.normal(k_sx, (B, T, 1, C, L), dtype=jnp.float32)
    slab = init_param_slab(k_par)

    logits = combined_forward(sx, slab)
    logits = jax.block_until_ready(logits)

    assert logits.shape == (B, NUM_CLASSES), logits.shape
    assert bool(jnp.all(jnp.isfinite(logits)))
    print("KERNEL_OK")
</pallas_src>

<mosaic_0001>
module attributes {stable_mosaic.version = 11 : i64} {
  func.func @combined_kernel(%arg0: memref<16x64xf32, #tpu.memory_space<vmem>>, %arg1: memref<328x128xf32, #tpu.memory_space<vmem>>, %arg2: memref<2x2xf32, #tpu.memory_space<vmem>>) attributes {dimension_semantics = [], scalar_prefetch = 0 : i64, scratch_operands = 0 : i64, tpu.core_type = #tpu.core_type<tc>} {
    %c0 = arith.constant 0 : index
    %c0_0 = arith.constant 0 : index
    %0 = vector.load %arg1[%c0, %c0_0] : memref<328x128xf32, #tpu.memory_space<vmem>>, vector<64x128xf32>
    %c64 = arith.constant 64 : index
    %c0_1 = arith.constant 0 : index
    %1 = vector.load %arg1[%c64, %c0_1] : memref<328x128xf32, #tpu.memory_space<vmem>>, vector<128x128xf32>
    %c192 = arith.constant 192 : index
    %c0_2 = arith.constant 0 : index
    %2 = vector.load %arg1[%c192, %c0_2] : memref<328x128xf32, #tpu.memory_space<vmem>>, vector<32x128xf32>
    %c224 = arith.constant 224 : index
    %c0_3 = arith.constant 0 : index
    %3 = vector.load %arg1[%c224, %c0_3] : memref<328x128xf32, #tpu.memory_space<vmem>>, vector<32x128xf32>
    %c256 = arith.constant 256 : index
    %c0_4 = arith.constant 0 : index
    %4 = vector.load %arg1[%c256, %c0_4] : memref<328x128xf32, #tpu.memory_space<vmem>>, vector<32x128xf32>
    %c288 = arith.constant 288 : index
    %c0_5 = arith.constant 0 : index
    %5 = vector.load %arg1[%c288, %c0_5] : memref<328x128xf32, #tpu.memory_space<vmem>>, vector<32x128xf32>
    %c320 = arith.constant 320 : index
    %c0_6 = arith.constant 0 : index
    %6 = vector.load %arg1[%c320, %c0_6] : memref<328x128xf32, #tpu.memory_space<vmem>>, vector<8x128xf32>
    %7 = vector.extract_strided_slice %6 {offsets = [0, 0], sizes = [1, 128], strides = [1, 1]} : vector<8x128xf32> to vector<1x128xf32>
    %8 = vector.extract_strided_slice %6 {offsets = [1, 0], sizes = [1, 128], strides = [1, 1]} : vector<8x128xf32> to vector<1x128xf32>
    %9 = vector.extract_strided_slice %6 {offsets = [2, 0], sizes = [1, 128], strides = [1, 1]} : vector<8x128xf32> to vector<1x128xf32>
    %10 = vector.extract_strided_slice %6 {offsets = [3, 0], sizes = [1, 128], strides = [1, 1]} : vector<8x128xf32> to vector<1x128xf32>
    %11 = vector.extract_strided_slice %6 {offsets = [4, 0], sizes = [1, 128], strides = [1, 1]} : vector<8x128xf32> to vector<1x128xf32>
    %c0_7 = arith.constant 0 : index
    %c0_8 = arith.constant 0 : index
    %12 = vector.load %arg0[%c0_7, %c0_8] : memref<16x64xf32, #tpu.memory_space<vmem>>, vector<16x64xf32>
    %cst = arith.constant dense<0.000000e+00> : vector<16x128xf32>
    %13 = tpu.matmul %12, %0, %cst {dimension_numbers = #tpu.dot_dimension_numbers<[1], [0], [0], [1], [0, 0, 1, 1], [], []>} : vector<16x64xf32>, vector<64x128xf32>, vector<16x128xf32> -> vector<16x128xf32>
    %14 = vector.broadcast %7 : vector<1x128xf32> to vector<16x128xf32>
    %15 = arith.addf %13, %14 : vector<16x128xf32>
    %16 = vector.shape_cast %15 : vector<16x128xf32> to vector<2x8x128xf32>
    %cst_9 = arith.constant 0.000000e+00 : f32
    %17 = vector.broadcast %cst_9 : f32 to vector<2x128xf32>
    %cst_10 = arith.constant 0.000000e+00 : f32
    %18 = vector.broadcast %cst_10 : f32 to vector<2x128xf32>
    %19 = vector.extract_strided_slice %16 {offsets = [0, 0, 0], sizes = [2, 1, 64], strides = [1, 1, 1]} : vector<2x8x128xf32> to vector<2x1x64xf32>
    %20 = vector.shape_cast %19 : vector<2x1x64xf32> to vector<2x64xf32>
    %21 = vector.extract_strided_slice %16 {offsets = [0, 7, 64], sizes = [2, 1, 64], strides = [1, 1, 1]} : vector<2x8x128xf32> to vector<2x1x64xf32>
    %22 = vector.shape_cast %21 : vector<2x1x64xf32> to vector<2x64xf32>
    %23 = tpu.concatenate %20, %22 in 1 : vector<2x64xf32>, vector<2x64xf32> -> vector<2x128xf32>
    %cst_11 = arith.constant dense<0.000000e+00> : vector<2x128xf32>
    %24 = tpu.matmul %17, %1, %cst_11 {dimension_numbers = #tpu.dot_dimension_numbers<[1], [0], [0], [1], [0, 0, 1, 1], [], []>} : vector<2x128xf32>, vector<128x128xf32>, vector<2x128xf32> -> vector<2x128xf32>
    %25 = arith.addf %23, %24 : vector<2x128xf32>
    %26 = arith.negf %25 : vector<2x128xf32>
    %27 = math.exp %26 : vector<2x128xf32>
    %cst_12 = arith.constant 1.000000e+00 : f32
    %28 = vector.broadcast %cst_12 : f32 to vector<2x128xf32>
    %29 = arith.addf %28, %27 : vector<2x128xf32>
    %30 = arith.divf %28, %29 : vector<2x128xf32>
    %31 = math.tanh %25 : vector<2x128xf32>
    %c112_i32 = arith.constant 112 : i32
    %32 = tpu.dynamic_rotate %30 by %c112_i32 dim 1 : vector<2x128xf32>, i32 -> vector<2x128xf32>
    %c96_i32 = arith.constant 96 : i32
    %33 = tpu.dynamic_rotate %31 by %c96_i32 dim 1 : vector<2x128xf32>, i32 -> vector<2x128xf32>
    %c80_i32 = arith.constant 80 : i32
    %34 = tpu.dynamic_rotate %30 by %c80_i32 dim 1 : vector<2x128xf32>, i32 -> vector<2x128xf32>
    %35 = arith.mulf %32, %18 : vector<2x128xf32>
    %36 = arith.mulf %30, %33 : vector<2x128xf32>
    %37 = arith.addf %35, %36 : vector<2x128xf32>
    %38 = math.tanh %37 : vector<2x128xf32>
    %39 = arith.mulf %34, %38 : vector<2x128xf32>
    %40 = vector.extract_strided_slice %16 {offsets = [0, 1, 0], sizes = [2, 1, 64], strides = [1, 1, 1]} : vector<2x8x128xf32> to vector<2x1x64xf32>
    %41 = vector.shape_cast %40 : vector<2x1x64xf32> to vector<2x64xf32>
    %42 = vector.extract_strided_slice %16 {offsets = [0, 6, 64], sizes = [2, 1, 64], strides = [1, 1, 1]} : vector<2x8x128xf32> to vector<2x1x64xf32>
    %43 = vector.shape_cast %42 : vector<2x1x64xf32> to vector<2x64xf32>
    %44 = tpu.concatenate %41, %43 in 1 : vector<2x64xf32>, vector<2x64xf32> -> vector<2x128xf32>
    %cst_13 = arith.constant dense<0.000000e+00> : vector<2x128xf32>
    %45 = tpu.matmul %39, %1, %cst_13 {dimension_numbers = #tpu.dot_dimension_numbers<[1], [0], [0], [1], [0, 0, 1, 1], [], []>} : vector<2x128xf32>, vector<128x128xf32>, vector<2x128xf32> -> vector<2x128xf32>
    %46 = arith.addf %44, %45 : vector<2x128xf32>
    %47 = arith.negf %46 : vector<2x128xf32>
    %48 = math.exp %47 : vector<2x128xf32>
    %cst_14 = arith.constant 1.000000e+00 : f32
    %49 = vector.broadcast %cst_14 : f32 to vector<2x128xf32>
    %50 = arith.addf %49, %48 : vector<2x128xf32>
    %51 = arith.divf %49, %50 : vector<2x128xf32>
    %52 = math.tanh %46 : vector<2x128xf32>
    %c112_i32_15 = arith.constant 112 : i32
    %53 = tpu.dynamic_rotate %51 by %c112_i32_15 dim 1 : vector<2x128xf32>, i32 -> vector<2x128xf32>
    %c96_i32_16 = arith.constant 96 : i32
    %54 = tpu.dynamic_rotate %52 by %c96_i32_16 dim 1 : vector<2x128xf32>, i32 -> vector<2x128xf32>
    %c80_i32_17 = arith.constant 80 : i32
    %55 = tpu.dynamic_rotate %51 by %c80_i32_17 dim 1 : vector<2x128xf32>, i32 -> vector<2x128xf32>
    %56 = arith.mulf %53, %37 : vector<2x128xf32>
    %57 = arith.mulf %51, %54 : vector<2x128xf32>
    %58 = arith.addf %56, %57 : vector<2x128xf32>
    %59 = math.tanh %58 : vector<2x128xf32>
    %60 = arith.mulf %55, %59 : vector<2x128xf32>
    %61 = vector.extract_strided_slice %16 {offsets = [0, 2, 0], sizes = [2, 1, 64], strides = [1, 1, 1]} : vector<2x8x128xf32> to vector<2x1x64xf32>
    %62 = vector.shape_cast %61 : vector<2x1x64xf32> to vector<2x64xf32>
    %63 = vector.extract_strided_slice %16 {offsets = [0, 5, 64], sizes = [2, 1, 64], strides = [1, 1, 1]} : vector<2x8x128xf32> to vector<2x1x64xf32>
    %64 = vector.shape_cast %63 : vector<2x1x64xf32> to vector<2x64xf32>
    %65 = tpu.concatenate %62, %64 in 1 : vector<2x64xf32>, vector<2x64xf32> -> vector<2x128xf32>
    %cst_18 = arith.constant dense<0.000000e+00> : vector<2x128xf32>
    %66 = tpu.matmul %60, %1, %cst_18 {dimension_numbers = #tpu.dot_dimension_numbers<[1], [0], [0], [1], [0, 0, 1, 1], [], []>} : vector<2x128xf32>, vector<128x128xf32>, vector<2x128xf32> -> vector<2x128xf32>
    %67 = arith.addf %65, %66 : vector<2x128xf32>
    %68 = arith.negf %67 : vector<2x128xf32>
    %69 = math.exp %68 : vector<2x128xf32>
    %cst_19 = arith.constant 1.000000e+00 : f32
    %70 = vector.broadcast %cst_19 : f32 to vector<2x128xf32>
    %71 = arith.addf %70, %69 : vector<2x128xf32>
    %72 = arith.divf %70, %71 : vector<2x128xf32>
    %73 = math.tanh %67 : vector<2x128xf32>
    %c112_i32_20 = arith.constant 112 : i32
    %74 = tpu.dynamic_rotate %72 by %c112_i32_20 dim 1 : vector<2x128xf32>, i32 -> vector<2x128xf32>
    %c96_i32_21 = arith.constant 96 : i32
    %75 = tpu.dynamic_rotate %73 by %c96_i32_21 dim 1 : vector<2x128xf32>, i32 -> vector<2x128xf32>
    %c80_i32_22 = arith.constant 80 : i32
    %76 = tpu.dynamic_rotate %72 by %c80_i32_22 dim 1 : vector<2x128xf32>, i32 -> vector<2x128xf32>
    %77 = arith.mulf %74, %58 : vector<2x128xf32>
    %78 = arith.mulf %72, %75 : vector<2x128xf32>
    %79 = arith.addf %77, %78 : vector<2x128xf32>
    %80 = math.tanh %79 : vector<2x128xf32>
    %81 = arith.mulf %76, %80 : vector<2x128xf32>
    %82 = vector.extract_strided_slice %16 {offsets = [0, 3, 0], sizes = [2, 1, 64], strides = [1, 1, 1]} : vector<2x8x128xf32> to vector<2x1x64xf32>
    %83 = vector.shape_cast %82 : vector<2x1x64xf32> to vector<2x64xf32>
    %84 = vector.extract_strided_slice %16 {offsets = [0, 4, 64], sizes = [2, 1, 64], strides = [1, 1, 1]} : vector<2x8x128xf32> to vector<2x1x64xf32>
    %85 = vector.shape_cast %84 : vector<2x1x64xf32> to vector<2x64xf32>
    %86 = tpu.concatenate %83, %85 in 1 : vector<2x64xf32>, vector<2x64xf32> -> vector<2x128xf32>
    %cst_23 = arith.constant dense<0.000000e+00> : vector<2x128xf32>
    %87 = tpu.matmul %81, %1, %cst_23 {dimension_numbers = #tpu.dot_dimension_numbers<[1], [0], [0], [1], [0, 0, 1, 1], [], []>} : vector<2x128xf32>, vector<128x128xf32>, vector<2x128xf32> -> vector<2x128xf32>
    %88 = arith.addf %86, %87 : vector<2x128xf32>
    %89 = arith.negf %88 : vector<2x128xf32>
    %90 = math.exp %89 : vector<2x128xf32>
    %cst_24 = arith.constant 1.000000e+00 : f32
    %91 = vector.broadcast %cst_24 : f32 to vector<2x128xf32>
    %92 = arith.addf %91, %90 : vector<2x128xf32>
    %93 = arith.divf %91, %92 : vector<2x128xf32>
    %94 = math.tanh %88 : vector<2x128xf32>
    %c112_i32_25 = arith.constant 112 : i32
    %95 = tpu.dynamic_rotate %93 by %c112_i32_25 dim 1 : vector<2x128xf32>, i32 -> vector<2x128xf32>
    %c96_i32_26 = arith.constant 96 : i32
    %96 = tpu.dynamic_rotate %94 by %c96_i32_26 dim 1 : vector<2x128xf32>, i32 -> vector<2x128xf32>
    %c80_i32_27 = arith.constant 80 : i32
    %97 = tpu.dynamic_rotate %93 by %c80_i32_27 dim 1 : vector<2x128xf32>, i32 -> vector<2x128xf32>
    %98 = arith.mulf %95, %79 : vector<2x128xf32>
    %99 = arith.mulf %93, %96 : vector<2x128xf32>
    %100 = arith.addf %98, %99 : vector<2x128xf32>
    %101 = math.tanh %100 : vector<2x128xf32>
    %102 = arith.mulf %97, %101 : vector<2x128xf32>
    %103 = vector.extract_strided_slice %16 {offsets = [0, 4, 0], sizes = [2, 1, 64], strides = [1, 1, 1]} : vector<2x8x128xf32> to vector<2x1x64xf32>
    %104 = vector.shape_cast %103 : vector<2x1x64xf32> to vector<2x64xf32>
    %105 = vector.extract_strided_slice %16 {offsets = [0, 3, 64], sizes = [2, 1, 64], strides = [1, 1, 1]} : vector<2x8x128xf32> to vector<2x1x64xf32>
    %106 = vector.shape_cast %105 : vector<2x1x64xf32> to vector<2x64xf32>
    %107 = tpu.concatenate %104, %106 in 1 : vector<2x64xf32>, vector<2x64xf32> -> vector<2x128xf32>
    %cst_28 = arith.constant dense<0.000000e+00> : vector<2x128xf32>
    %108 = tpu.matmul %102, %1, %cst_28 {dimension_numbers = #tpu.dot_dimension_numbers<[1], [0], [0], [1], [0, 0, 1, 1], [], []>} : vector<2x128xf32>, vector<128x128xf32>, vector<2x128xf32> -> vector<2x128xf32>
    %109 = arith.addf %107, %108 : vector<2x128xf32>
    %110 = arith.negf %109 : vector<2x128xf32>
    %111 = math.exp %110 : vector<2x128xf32>
    %cst_29 = arith.constant 1.000000e+00 : f32
    %112 = vector.broadcast %cst_29 : f32 to vector<2x128xf32>
    %113 = arith.addf %112, %111 : vector<2x128xf32>
    %114 = arith.divf %112, %113 : vector<2x128xf32>
    %115 = math.tanh %109 : vector<2x128xf32>
    %c112_i32_30 = arith.constant 112 : i32
    %116 = tpu.dynamic_rotate %114 by %c112_i32_30 dim 1 : vector<2x128xf32>, i32 -> vector<2x128xf32>
    %c96_i32_31 = arith.constant 96 : i32
    %117 = tpu.dynamic_rotate %115 by %c96_i32_31 dim 1 : vector<2x128xf32>, i32 -> vector<2x128xf32>
    %c80_i32_32 = arith.constant 80 : i32
    %118 = tpu.dynamic_rotate %114 by %c80_i32_32 dim 1 : vector<2x128xf32>, i32 -> vector<2x128xf32>
    %119 = arith.mulf %116, %100 : vector<2x128xf32>
    %120 = arith.mulf %114, %117 : vector<2x128xf32>
    %121 = arith.addf %119, %120 : vector<2x128xf32>
    %122 = math.tanh %121 : vector<2x128xf32>
    %123 = arith.mulf %118, %122 : vector<2x128xf32>
    %124 = vector.extract_strided_slice %16 {offsets = [0, 5, 0], sizes = [2, 1, 64], strides = [1, 1, 1]} : vector<2x8x128xf32> to vector<2x1x64xf32>
    %125 = vector.shape_cast %124 : vector<2x1x64xf32> to vector<2x64xf32>
    %126 = vector.extract_strided_slice %16 {offsets = [0, 2, 64], sizes = [2, 1, 64], strides = [1, 1, 1]} : vector<2x8x128xf32> to vector<2x1x64xf32>
    %127 = vector.shape_cast %126 : vector<2x1x64xf32> to vector<2x64xf32>
    %128 = tpu.concatenate %125, %127 in 1 : vector<2x64xf32>, vector<2x64xf32> -> vector<2x128xf32>
    %cst_33 = arith.constant dense<0.000000e+00> : vector<2x128xf32>
    %129 = tpu.matmul %123, %1, %cst_33 {dimension_numbers = #tpu.dot_dimension_numbers<[1], [0], [0], [1], [0, 0, 1, 1], [], []>} : vector<2x128xf32>, vector<128x128xf32>, vector<2x128xf32> -> vector<2x128xf32>
    %130 = arith.addf %128, %129 : vector<2x128xf32>
    %131 = arith.negf %130 : vector<2x128xf32>
    %132 = math.exp %131 : vector<2x128xf32>
    %cst_34 = arith.constant 1.000000e+00 : f32
    %133 = vector.broadcast %cst_34 : f32 to vector<2x128xf32>
    %134 = arith.addf %133, %132 : vector<2x128xf32>
    %135 = arith.divf %133, %134 : vector<2x128xf32>
    %136 = math.tanh %130 : vector<2x128xf32>
    %c112_i32_35 = arith.constant 112 : i32
    %137 = tpu.dynamic_rotate %135 by %c112_i32_35 dim 1 : vector<2x128xf32>, i32 -> vector<2x128xf32>
    %c96_i32_36 = arith.constant 96 : i32
    %138 = tpu.dynamic_rotate %136 by %c96_i32_36 dim 1 : vector<2x128xf32>, i32 -> vector<2x128xf32>
    %c80_i32_37 = arith.constant 80 : i32
    %139 = tpu.dynamic_rotate %135 by %c80_i32_37 dim 1 : vector<2x128xf32>, i32 -> vector<2x128xf32>
    %140 = arith.mulf %137, %121 : vector<2x128xf32>
    %141 = arith.mulf %135, %138 : vector<2x128xf32>
    %142 = arith.addf %140, %141 : vector<2x128xf32>
    %143 = math.tanh %142 : vector<2x128xf32>
    %144 = arith.mulf %139, %143 : vector<2x128xf32>
    %145 = vector.extract_strided_slice %16 {offsets = [0, 6, 0], sizes = [2, 1, 64], strides = [1, 1, 1]} : vector<2x8x128xf32> to vector<2x1x64xf32>
    %146 = vector.shape_cast %145 : vector<2x1x64xf32> to vector<2x64xf32>
    %147 = vector.extract_strided_slice %16 {offsets = [0, 1, 64], sizes = [2, 1, 64], strides = [1, 1, 1]} : vector<2x8x128xf32> to vector<2x1x64xf32>
    %148 = vector.shape_cast %147 : vector<2x1x64xf32> to vector<2x64xf32>
    %149 = tpu.concatenate %146, %148 in 1 : vector<2x64xf32>, vector<2x64xf32> -> vector<2x128xf32>
    %cst_38 = arith.constant dense<0.000000e+00> : vector<2x128xf32>
    %150 = tpu.matmul %144, %1, %cst_38 {dimension_numbers = #tpu.dot_dimension_numbers<[1], [0], [0], [1], [0, 0, 1, 1], [], []>} : vector<2x128xf32>, vector<128x128xf32>, vector<2x128xf32> -> vector<2x128xf32>
    %151 = arith.addf %149, %150 : vector<2x128xf32>
    %152 = arith.negf %151 : vector<2x128xf32>
    %153 = math.exp %152 : vector<2x128xf32>
    %cst_39 = arith.constant 1.000000e+00 : f32
    %154 = vector.broadcast %cst_39 : f32 to vector<2x128xf32>
    %155 = arith.addf %154, %153 : vector<2x128xf32>
    %156 = arith.divf %154, %155 : vector<2x128xf32>
    %157 = math.tanh %151 : vector<2x128xf32>
    %c112_i32_40 = arith.constant 112 : i32
    %158 = tpu.dynamic_rotate %156 by %c112_i32_40 dim 1 : vector<2x128xf32>, i32 -> vector<2x128xf32>
    %c96_i32_41 = arith.constant 96 : i32
    %159 = tpu.dynamic_rotate %157 by %c96_i32_41 dim 1 : vector<2x128xf32>, i32 -> vector<2x128xf32>
    %c80_i32_42 = arith.constant 80 : i32
    %160 = tpu.dynamic_rotate %156 by %c80_i32_42 dim 1 : vector<2x128xf32>, i32 -> vector<2x128xf32>
    %161 = arith.mulf %158, %142 : vector<2x128xf32>
    %162 = arith.mulf %156, %159 : vector<2x128xf32>
    %163 = arith.addf %161, %162 : vector<2x128xf32>
    %164 = math.tanh %163 : vector<2x128xf32>
    %165 = arith.mulf %160, %164 : vector<2x128xf32>
    %166 = vector.extract_strided_slice %16 {offsets = [0, 7, 0], sizes = [2, 1, 64], strides = [1, 1, 1]} : vector<2x8x128xf32> to vector<2x1x64xf32>
    %167 = vector.shape_cast %166 : vector<2x1x64xf32> to vector<2x64xf32>
    %168 = vector.extract_strided_slice %16 {offsets = [0, 0, 64], sizes = [2, 1, 64], strides = [1, 1, 1]} : vector<2x8x128xf32> to vector<2x1x64xf32>
    %169 = vector.shape_cast %168 : vector<2x1x64xf32> to vector<2x64xf32>
    %170 = tpu.concatenate %167, %169 in 1 : vector<2x64xf32>, vector<2x64xf32> -> vector<2x128xf32>
    %cst_43 = arith.constant dense<0.000000e+00> : vector<2x128xf32>
    %171 = tpu.matmul %165, %1, %cst_43 {dimension_numbers = #tpu.dot_dimension_numbers<[1], [0], [0], [1], [0, 0, 1, 1], [], []>} : vector<2x128xf32>, vector<128x128xf32>, vector<2x128xf32> -> vector<2x128xf32>
    %172 = arith.addf %170, %171 : vector<2x128xf32>
    %173 = arith.negf %172 : vector<2x128xf32>
    %174 = math.exp %173 : vector<2x128xf32>
    %cst_44 = arith.constant 1.000000e+00 : f32
    %175 = vector.broadcast %cst_44 : f32 to vector<2x128xf32>
    %176 = arith.addf %175, %174 : vector<2x128xf32>
    %177 = arith.divf %175, %176 : vector<2x128xf32>
    %178 = math.tanh %172 : vector<2x128xf32>
    %c112_i32_45 = arith.constant 112 : i32
    %179 = tpu.dynamic_rotate %177 by %c112_i32_45 dim 1 : vector<2x128xf32>, i32 -> vector<2x128xf32>
    %c96_i32_46 = arith.constant 96 : i32
    %180 = tpu.dynamic_rotate %178 by %c96_i32_46 dim 1 : vector<2x128xf32>, i32 -> vector<2x128xf32>
    %c80_i32_47 = arith.constant 80 : i32
    %181 = tpu.dynamic_rotate %177 by %c80_i32_47 dim 1 : vector<2x128xf32>, i32 -> vector<2x128xf32>
    %182 = arith.mulf %179, %163 : vector<2x128xf32>
    %183 = arith.mulf %177, %180 : vector<2x128xf32>
    %184 = arith.addf %182, %183 : vector<2x128xf32>
    %185 = math.tanh %184 : vector<2x128xf32>
    %186 = arith.mulf %181, %185 : vector<2x128xf32>
    %187 = tpu.iota {dimensions = array<i32: 1>} : vector<1x128xi32>
    %c16_i32 = arith.constant 16 : i32
    %188 = vector.broadcast %c16_i32 : i32 to vector<1x128xi32>
    %189 = arith.cmpi slt, %187, %188 : vector<1x128xi32>
    %190 = arith.extui %189 : vector<1x128xi1> to vector<1x128xi32>
    %191 = arith.sitofp %190 : vector<1x128xi32> to vector<1x128xf32>
    %c64_i32 = arith.constant 64 : i32
    %192 = vector.broadcast %c64_i32 : i32 to vector<1x128xi32>
    %193 = arith.cmpi sge, %187, %192 : vector<1x128xi32>
    %c80_i32_48 = arith.constant 80 : i32
    %194 = vector.broadcast %c80_i32_48 : i32 to vector<1x128xi32>
    %195 = arith.cmpi slt, %187, %194 : vector<1x128xi32>
    %196 = arith.andi %193, %195 : vector<1x128xi1>
    %197 = arith.extui %196 : vector<1x128xi1> to vector<1x128xi32>
    %198 = arith.sitofp %197 : vector<1x128xi32> to vector<1x128xf32>
    %199 = vector.broadcast %191 : vector<1x128xf32> to vector<2x128xf32>
    %200 = arith.mulf %39, %199 : vector<2x128xf32>
    %201 = vector.broadcast %198 : vector<1x128xf32> to vector<2x128xf32>
    %202 = arith.mulf %186, %201 : vector<2x128xf32>
    %203 = arith.addf %200, %202 : vector<2x128xf32>
    %204 = vector.broadcast %191 : vector<1x128xf32> to vector<2x128xf32>
    %205 = arith.mulf %60, %204 : vector<2x128xf32>
    %206 = vector.broadcast %198 : vector<1x128xf32> to vector<2x128xf32>
    %207 = arith.mulf %165, %206 : vector<2x128xf32>
    %208 = arith.addf %205, %207 : vector<2x128xf32>
    %209 = vector.broadcast %191 : vector<1x128xf32> to vector<2x128xf32>
    %210 = arith.mulf %81, %209 : vector<2x128xf32>
    %211 = vector.broadcast %198 : vector<1x128xf32> to vector<2x128xf32>
    %212 = arith.mulf %144, %211 : vector<2x128xf32>
    %213 = arith.addf %210, %212 : vector<2x128xf32>
    %214 = vector.broadcast %191 : vector<1x128xf32> to vector<2x128xf32>
    %215 = arith.mulf %102, %214 : vector<2x128xf32>
    %216 = vector.broadcast %198 : vector<1x128xf32> to vector<2x128xf32>
    %217 = arith.mulf %123, %216 : vector<2x128xf32>
    %218 = arith.addf %215, %217 : vector<2x128xf32>
    %219 = vector.broadcast %191 : vector<1x128xf32> to vector<2x128xf32>
    %220 = arith.mulf %123, %219 : vector<2x128xf32>
    %221 = vector.broadcast %198 : vector<1x128xf32> to vector<2x128xf32>
    %222 = arith.mulf %102, %221 : vector<2x128xf32>
    %223 = arith.addf %220, %222 : vector<2x128xf32>
    %224 = vector.broadcast %191 : vector<1x128xf32> to vector<2x128xf32>
    %225 = arith.mulf %144, %224 : vector<2x128xf32>
    %226 = vector.broadcast %198 : vector<1x128xf32> to vector<2x128xf32>
    %227 = arith.mulf %81, %226 : vector<2x128xf32>
    %228 = arith.addf %225, %227 : vector<2x128xf32>
    %229 = vector.broadcast %191 : vector<1x128xf32> to vector<2x128xf32>
    %230 = arith.mulf %165, %229 : vector<2x128xf32>
    %231 = vector.broadcast %198 : vector<1x128xf32> to vector<2x128xf32>
    %232 = arith.mulf %60, %231 : vector<2x128xf32>
    %233 = arith.addf %230, %232 : vector<2x128xf32>
    %234 = vector.broadcast %191 : vector<1x128xf32> to vector<2x128xf32>
    %235 = arith.mulf %186, %234 : vector<2x128xf32>
    %236 = vector.broadcast %198 : vector<1x128xf32> to vector<2x128xf32>
    %237 = arith.mulf %39, %236 : vector<2x128xf32>
    %238 = arith.addf %235, %237 : vector<2x128xf32>
    %239 = tpu.concatenate %203, %208, %213, %218, %223, %228, %233, %238 in 0 : vector<2x128xf32>, vector<2x128xf32>, vector<2x128xf32>, vector<2x128xf32>, vector<2x128xf32>, vector<2x128xf32>, vector<2x128xf32>, vector<2x128xf32> -> vector<16x128xf32>
    %240 = vector.extract_strided_slice %239 {offsets = [0, 0], sizes = [16, 16], strides = [1, 1]} : vector<16x128xf32> to vector<16x16xf32>
    %241 = vector.extract_strided_slice %239 {offsets = [0, 64], sizes = [16, 16], strides = [1, 1]} : vector<16x128xf32> to vector<16x16xf32>
    %242 = tpu.concatenate %240, %241 in 1 : vector<16x16xf32>, vector<16x16xf32> -> vector<16x32xf32>
    %243 = vector.extract_strided_slice %242 {offsets = [14, 0], sizes = [2, 32], strides = [1, 1]} : vector<16x32xf32> to vector<2x32xf32>
    %cst_49 = arith.constant dense<0.000000e+00> : vector<16x128xf32>
    %244 = tpu.matmul %242, %2, %cst_49 {dimension_numbers = #tpu.dot_dimension_numbers<[1], [0], [0], [1], [0, 0, 1, 1], [], []>} : vector<16x32xf32>, vector<32x128xf32>, vector<16x128xf32> -> vector<16x128xf32>
    %cst_50 = arith.constant dense<0.000000e+00> : vector<2x128xf32>
    %245 = tpu.matmul %243, %3, %cst_50 {dimension_numbers = #tpu.dot_dimension_numbers<[1], [0], [0], [1], [0, 0, 1, 1], [], []>} : vector<2x32xf32>, vector<32x128xf32>, vector<2x128xf32> -> vector<2x128xf32>
    %246 = vector.shape_cast %244 : vector<16x128xf32> to vector<8x2x128xf32>
    %247 = vector.shape_cast %245 : vector<2x128xf32> to vector<1x2x128xf32>
    %248 = vector.broadcast %247 : vector<1x2x128xf32> to vector<8x2x128xf32>
    %249 = arith.addf %246, %248 : vector<8x2x128xf32>
    %250 = vector.shape_cast %8 : vector<1x128xf32> to vector<1x1x128xf32>
    %251 = vector.broadcast %250 : vector<1x1x128xf32> to vector<8x2x128xf32>
    %252 = arith.addf %249, %251 : vector<8x2x128xf32>
    %cst_51 = arith.constant 0.000000e+00 : f32
    %253 = vector.broadcast %cst_51 : f32 to vector<8x2x128xf32>
    %254 = arith.maximumf %252, %253 : vector<8x2x128xf32>
    %255 = vector.shape_cast %9 : vector<1x128xf32> to vector<1x1x128xf32>
    %256 = vector.broadcast %255 : vector<1x1x128xf32> to vector<8x2x128xf32>
    %257 = arith.mulf %254, %256 : vector<8x2x128xf32>
    %cst_52 = arith.constant dense<0.000000e+00> : vector<8x2xf32>
    %258 = vector.multi_reduction <add>, %257, %cst_52 [2] : vector<8x2x128xf32> to vector<8x2xf32>
    %cst_53 = arith.constant dense<0xFF800000> : vector<8xf32>
    %259 = vector.multi_reduction <maximumf>, %258, %cst_53 [1] : vector<8x2xf32> to vector<8xf32>
    %260 = vector.shape_cast %259 : vector<8xf32> to vector<8x1xf32>
    %261 = vector.broadcast %260 : vector<8x1xf32> to vector<8x2xf32>
    %262 = arith.subf %258, %261 : vector<8x2xf32>
    %263 = math.exp %262 : vector<8x2xf32>
    %cst_54 = arith.constant dense<0.000000e+00> : vector<8xf32>
    %264 = vector.multi_reduction <add>, %263, %cst_54 [1] : vector<8x2xf32> to vector<8xf32>
    %265 = vector.shape_cast %264 : vector<8xf32> to vector<8x1xf32>
    %266 = vector.broadcast %265 : vector<8x1xf32> to vector<8x2xf32>
    %267 = arith.divf %263, %266 : vector<8x2xf32>
    %268 = vector.shape_cast %267 : vector<8x2xf32> to vector<8x2x1xf32>
    %269 = vector.shape_cast %242 : vector<16x32xf32> to vector<8x2x32xf32>
    %270 = vector.broadcast %268 : vector<8x2x1xf32> to vector<8x2x32xf32>
    %271 = arith.mulf %270, %269 : vector<8x2x32xf32>
    %cst_55 = arith.constant dense<0.000000e+00> : vector<2x32xf32>
    %272 = vector.multi_reduction <add>, %271, %cst_55 [0] : vector<8x2x32xf32> to vector<2x32xf32>
    %cst_56 = arith.constant dense<0.000000e+00> : vector<2x128xf32>
    %273 = tpu.matmul %272, %4, %cst_56 {dimension_numbers = #tpu.dot_dimension_numbers<[1], [0], [0], [1], [0, 0, 1, 1], [], []>} : vector<2x32xf32>, vector<32x128xf32>, vector<2x128xf32> -> vector<2x128xf32>
    %274 = vector.broadcast %10 : vector<1x128xf32> to vector<2x128xf32>
    %275 = arith.addf %273, %274 : vector<2x128xf32>
    %cst_57 = arith.constant 0.000000e+00 : f32
    %276 = vector.broadcast %cst_57 : f32 to vector<2x128xf32>
    %277 = arith.maximumf %275, %276 : vector<2x128xf32>
    %278 = vector.extract_strided_slice %277 {offsets = [0, 0], sizes = [2, 32], strides = [1, 1]} : vector<2x128xf32> to vector<2x32xf32>
    %cst_58 = arith.constant dense<0.000000e+00> : vector<2x128xf32>
    %279 = tpu.matmul %278, %5, %cst_58 {dimension_numbers = #tpu.dot_dimension_numbers<[1], [0], [0], [1], [0, 0, 1, 1], [], []>} : vector<2x32xf32>, vector<32x128xf32>, vector<2x128xf32> -> vector<2x128xf32>
    %280 = vector.broadcast %11 : vector<1x128xf32> to vector<2x128xf32>
    %281 = arith.addf %279, %280 : vector<2x128xf32>
    %282 = vector.extract_strided_slice %281 {offsets = [0, 0], sizes = [2, 2], strides = [1, 1]} : vector<2x128xf32> to vector<2x2xf32>
    %c0_59 = arith.constant 0 : index
    %c0_60 = arith.constant 0 : index
    %283 = vector.load %arg2[%c0_59, %c0_60] : memref<2x2xf32, #tpu.memory_space<vmem>>, vector<2x2xf32>
    tpu.vector_store %arg2[%c0_59, %c0_60], %282 {strides = array<i32>} : memref<2x2xf32, #tpu.memory_space<vmem>>, vector<2x2xf32>,
    return
  }
}

</mosaic_0001>

<bundles_post_ra>
// kernel: combined_forward.1
= control target key start
LH: loop header
LB: loop body
LE: loop exit
PB: predicated region body
PF: predicated region fallthrough
CT: control target
= control target key end

     0   :  { %7 = vsyncpa [#allocation3], 0  ;;  %s2045_s0 = inlined_call_operand.vmem [shape: f32[16,64], index: 0, kind: input, shape index: {}]   ;;  %s2046_s1 = inlined_call_operand.hbm [shape: f32[328,128], index: 1, kind: input, shape index: {}]   ;;  %s2047_s2 = inlined_call_operand.hbm [shape: f32[2,2], index: 2, kind: output, shape index: {}]  }
   0x1   :  { %8 = vsyncpa [#allocation4], 0  ;;  %s15_s11 = sshll.u32 %s2046_s1, 4  ;;  %s1495_s12 = smov [#allocation2]   ;;  %s16_s11 = int_to_ptr.hbm [resolvable:$true] %s15_s11 }
   0x2   :  { %s17_s13 = sshll.u32 %s1495_s12, 4  ;;  %s1496_s14 = smov 128   ;;  %s18_s13 = int_to_ptr.vmem [resolvable:$true] %s17_s13 }
   0x3   :  { %s1497_s15 = smov 8  }
   0x4   :  { %23 = dma.hbm_to_vmem [thread:$0]  %s16_s11, 5248, %s18_s13, [#allocation3], %s1496_s14, %s1496_s14, %s1497_s15  }
   0x5   :  { %1491 = dma.done.wait [#allocation3], 5248  }
   0x6   :  { %1492 = vsyncadd [#allocation3], 4294962048  ;;  %v35_v0 = vld [vmem:[#allocation2 + $0x38] sm:$0xff]  ;;  %v34_v2 = vld [vmem:[#allocation2 + $0x30] sm:$0xff]  ;;  %vm72_vm0 = vcmask 523264   ;;  %v1498_v26 = vmov 0.0  }
   0x7   :  { %v1522_v1 = vld [vmem:[#allocation2 + $0xb8] sm:$0xff]  ;;  %87 = vmatpush.msra.mxu0 %v35_v0  ;;  %v1525_v3 = vld [vmem:[#allocation2 + $0xb0] sm:$0xff]  ;;  %v33_v4 = vld [vmem:[#allocation2 + $0x28] sm:$0xff]  ;;  %vm105_vm1 = vcmask 1041409   ;;  %vm165_vm2 = vcmask 1042434   ;;  %vm315_vm3 = vcmask 1044484  }
   0x8   :  { %113 = vmatpush.msra.mxu1 %v1522_v1  ;;  %v1527_v5 = vld [vmem:[#allocation2 + $0xa8] sm:$0xff]  ;;  %173 = vmatpush.msra.mxu2 %v1522_v1  ;;  %v32_v6 = vld [vmem:[#allocation2 + $0x20] sm:$0xff]  ;;  %v31_v8 = vld [vmem:[#allocation2 + $0x18] sm:$0xff]  ;;  %vm240_vm4 = vcmask 1043459   ;;  %vm389_vm5 = vcmask 1045509   ;;  %vm2049_vm6 = vcmask 1046534  }
   0x9   :  { %248 = vmatpush.msra.mxu3 %v1522_v1  ;;  %88 = vmatpush.msra.mxu0 %v34_v2  ;;  %v1532_v7 = vld [vmem:[#allocation2 + $0xa0] sm:$0xff]  ;;  %v1537_v9 = vld [vmem:[#allocation2 + $0x98] sm:$0xff]  ;;  %v30_v10 = vld [vmem:[#allocation2 + $0x10] sm:$0xff]  ;;  %vm2048_vm7 = vcmask 1047559   ;;  %s1500_s19 = smov 112   ;;  %s1501_s20 = smov 96  }
   0xa   :  { %114 = vmatpush.msra.mxu1 %v1525_v3  ;;  %174 = vmatpush.msra.mxu2 %v1525_v3  ;;  %v1542_v11 = vld [vmem:[#allocation2 + $0x90] sm:$0xff]  ;;  %v29_v12 = vld [vmem:[#allocation2 + $0x8] sm:$0xff]  ;;  %v28_v14 = vld [vmem:[#allocation2] sm:$0xff]  ;;  %s1503_s21 = smov [#allocation5]   ;;  %s1300_s25 = sshll.u32 %s2047_s2, 4  ;;  %s1301_s25 = int_to_ptr.hbm [resolvable:$true] %s1300_s25 }
   0xb   :  { %249 = vmatpush.msra.mxu3 %v1525_v3  ;;  %89 = vmatpush.msra.mxu0 %v33_v4  ;;  %v1547_v13 = vld [vmem:[#allocation2 + $0x88] sm:$0xff]  ;;  %v1552_v15 = vld [vmem:[#allocation2 + $0x80] sm:$0xff]  ;;  %v1560_v17 = vld [vmem:[#allocation2 + $0x78] sm:$0xff]  ;;  %s1298_s22 = sshll.u32 %s1503_s21, 4  ;;  %s1299_s22 = int_to_ptr.vmem [resolvable:$true] %s1298_s22 }
   0xc   :  { %115 = vmatpush.msra.mxu1 %v1527_v5  ;;  %175 = vmatpush.msra.mxu2 %v1527_v5  ;;  %v69_v16 = vld [vmem:[%s2045_s0] sm:$0xff]  ;;  %v1566_v18 = vld [vmem:[#allocation2 + $0x70] sm:$0xff]  ;;  %v1571_v19 = vld [vmem:[#allocation2 + $0x68] sm:$0xff] }
   0xd   :  { %250 = vmatpush.msra.mxu3 %v1527_v5  ;;  %90 = vmatpush.msra.mxu0 %v32_v6  ;;  %v1577_v20 = vld [vmem:[#allocation2 + $0x60] sm:$0xff]  ;;  %v70_v21 = vld [vmem:[%s2045_s0 + $0x8] sm:$0xff]  ;;  %v1586_v22 = vld [vmem:[#allocation2 + $0x58] sm:$0xff]  ;;  %s1499_s0 = smov 80  }
   0xe   :  { %116 = vmatpush.msra.mxu1 %v1532_v7  ;;  %176 = vmatpush.msra.mxu2 %v1532_v7  ;;  %v1593_v23 = vld [vmem:[#allocation2 + $0x50] sm:$0xff]  ;;  %v1598_v24 = vld [vmem:[#allocation2 + $0x48] sm:$0xff]  ;;  %v1604_v25 = vld [vmem:[#allocation2 + $0x40] sm:$0xff] }
   0xf   :  { %251 = vmatpush.msra.mxu3 %v1532_v7  ;;  %91 = vmatpush.msra.mxu0 %v31_v8  ;;  %v1691_v27 = vld [vmem:[#allocation2 + $0x140] sm:$0xff] }
  0x10   :  { %117 = vmatpush.msra.mxu1 %v1537_v9  ;;  %177 = vmatpush.msra.mxu2 %v1537_v9  ;;  %v71_v28 = vperm.slane %v1691_v27, 0 }
  0x11   :  { %252 = vmatpush.msra.mxu3 %v1537_v9  ;;  %92 = vmatpush.msra.mxu0 %v30_v10 }
  0x12   :  { %118 = vmatpush.msra.mxu1 %v1542_v11  ;;  %178 = vmatpush.msra.mxu2 %v1542_v11 }
  0x13   :  { %253 = vmatpush.msra.mxu3 %v1542_v11  ;;  %93 = vmatpush.msra.mxu0 %v29_v12 }
  0x14   :  { %119 = vmatpush.msra.mxu1 %v1547_v13  ;;  %179 = vmatpush.msra.mxu2 %v1547_v13 }
  0x15   :  { %254 = vmatpush.msra.mxu3 %v1547_v13  ;;  %94 = vmatpush.msra.mxu0 %v28_v14 }
  0x16   :  { %120 = vmatpush.msra.mxu1 %v1552_v15  ;;  %1310 = vmatmul.msk.f32.vlgmr.msra.gmra.mxu0 %vm72_vm0, %v69_v16 }
  0x17   :  { %180 = vmatpush.msra.mxu2 %v1552_v15  ;;  %255 = vmatpush.msra.mxu3 %v1552_v15 }
  0x18   :  { %121 = vmatpush.msra.mxu1 %v1560_v17  ;;  %322 = vmatpush.msrb.mxu0 %v1522_v1 }
  0x19   :  { %181 = vmatpush.msra.mxu2 %v1560_v17  ;;  %256 = vmatpush.msra.mxu3 %v1560_v17 }
  0x1a   :  { %122 = vmatpush.msra.mxu1 %v1566_v18  ;;  %323 = vmatpush.msrb.mxu0 %v1525_v3 }
  0x1b   :  { %182 = vmatpush.msra.mxu2 %v1566_v18  ;;  %257 = vmatpush.msra.mxu3 %v1566_v18 }
  0x1c   :  { %123 = vmatpush.msra.mxu1 %v1571_v19  ;;  %324 = vmatpush.msrb.mxu0 %v1527_v5 }
  0x1d   :  { %183 = vmatpush.msra.mxu2 %v1571_v19  ;;  %258 = vmatpush.msra.mxu3 %v1571_v19 }
  0x1e   :  { %124 = vmatpush.msra.mxu1 %v1577_v20  ;;  %1311 = vmatmul.msk.f32.gmra.mxu0 %vm72_vm0, %v70_v21 }
  0x1f   :  { %184 = vmatpush.msra.mxu2 %v1577_v20  ;;  %259 = vmatpush.msra.mxu3 %v1577_v20 }
  0x20   :  { %125 = vmatpush.msra.mxu1 %v1586_v22  ;;  %325 = vmatpush.msrb.mxu0 %v1532_v7 }
  0x21   :  { %185 = vmatpush.msra.mxu2 %v1586_v22  ;;  %260 = vmatpush.msra.mxu3 %v1586_v22 }
  0x22   :  { %126 = vmatpush.msra.mxu1 %v1593_v23  ;;  %326 = vmatpush.msrb.mxu0 %v1537_v9 }
  0x23   :  { %186 = vmatpush.msra.mxu2 %v1593_v23  ;;  %261 = vmatpush.msra.mxu3 %v1593_v23 }
  0x24   :  { %127 = vmatpush.msra.mxu1 %v1598_v24  ;;  %327 = vmatpush.msrb.mxu0 %v1542_v11 }
  0x25   :  { %187 = vmatpush.msra.mxu2 %v1598_v24  ;;  %262 = vmatpush.msra.mxu3 %v1598_v24 }
  0x26   :  { %128 = vmatpush.msra.mxu1 %v1604_v25  ;;  %328 = vmatpush.msrb.mxu0 %v1547_v13 }
  0x27   :  { %129 = vmatmul.f32.vlgmr.msra.gmra.mxu1 %v1498_v26  ;;  %188 = vmatpush.msra.mxu2 %v1604_v25 }
  0x28   :  { %263 = vmatpush.msra.mxu3 %v1604_v25  ;;  %395 = vmatpush.msrb.mxu1 %v1522_v1 }
  0x29   :  { %468 = vmatpush.msrb.mxu2 %v1522_v1  ;;  %329 = vmatpush.msrb.mxu0 %v1552_v15 }
  0x2a   :  { %541 = vmatpush.msrb.mxu3 %v1522_v1  ;;  %396 = vmatpush.msrb.mxu1 %v1525_v3 }
  0x2b   :  { %469 = vmatpush.msrb.mxu2 %v1525_v3  ;;  %330 = vmatpush.msrb.mxu0 %v1560_v17 }
  0x2c   :  { %542 = vmatpush.msrb.mxu3 %v1525_v3  ;;  %397 = vmatpush.msrb.mxu1 %v1527_v5 }
  0x2d   :  { %470 = vmatpush.msrb.mxu2 %v1527_v5  ;;  %331 = vmatpush.msrb.mxu0 %v1566_v18 }
  0x2e   :  { %543 = vmatpush.msrb.mxu3 %v1527_v5  ;;  %398 = vmatpush.msrb.mxu1 %v1532_v7 }
  0x2f   :  { %471 = vmatpush.msrb.mxu2 %v1532_v7  ;;  %332 = vmatpush.msrb.mxu0 %v1571_v19 }
  0x30   :  { %544 = vmatpush.msrb.mxu3 %v1532_v7  ;;  %399 = vmatpush.msrb.mxu1 %v1537_v9 }
  0x31   :  { %472 = vmatpush.msrb.mxu2 %v1537_v9  ;;  %333 = vmatpush.msrb.mxu0 %v1577_v20 }
  0x32   :  { %545 = vmatpush.msrb.mxu3 %v1537_v9  ;;  %400 = vmatpush.msrb.mxu1 %v1542_v11 }
  0x33   :  { %473 = vmatpush.msrb.mxu2 %v1542_v11  ;;  %334 = vmatpush.msrb.mxu0 %v1586_v22 }
  0x34   :  { %546 = vmatpush.msrb.mxu3 %v1542_v11  ;;  %401 = vmatpush.msrb.mxu1 %v1547_v13 }
  0x35   :  { %474 = vmatpush.msrb.mxu2 %v1547_v13  ;;  %335 = vmatpush.msrb.mxu0 %v1593_v23 }
  0x36   :  { %547 = vmatpush.msrb.mxu3 %v1547_v13  ;;  %402 = vmatpush.msrb.mxu1 %v1552_v15 }
  0x37   :  { %475 = vmatpush.msrb.mxu2 %v1552_v15  ;;  %336 = vmatpush.msrb.mxu0 %v1598_v24 }
  0x38   :  { %548 = vmatpush.msrb.mxu3 %v1552_v15  ;;  %403 = vmatpush.msrb.mxu1 %v1560_v17 }
  0x39   :  { %476 = vmatpush.msrb.mxu2 %v1560_v17  ;;  %337 = vmatpush.msrb.mxu0 %v1604_v25 }
  0x3a   :  { %549 = vmatpush.msrb.mxu3 %v1560_v17  ;;  %404 = vmatpush.msrb.mxu1 %v1566_v18 }
  0x3b   :  { %477 = vmatpush.msrb.mxu2 %v1566_v18  ;;  %614 = vmatpush.msra.mxu0 %v1522_v1 }
  0x3c   :  { %550 = vmatpush.msrb.mxu3 %v1566_v18  ;;  %405 = vmatpush.msrb.mxu1 %v1571_v19 }
  0x3d   :  { %478 = vmatpush.msrb.mxu2 %v1571_v19  ;;  %615 = vmatpush.msra.mxu0 %v1525_v3 }
  0x3e   :  { %551 = vmatpush.msrb.mxu3 %v1571_v19  ;;  %406 = vmatpush.msrb.mxu1 %v1577_v20 }
  0x3f   :  { %479 = vmatpush.msrb.mxu2 %v1577_v20  ;;  %616 = vmatpush.msra.mxu0 %v1527_v5 }
  0x40   :  { %552 = vmatpush.msrb.mxu3 %v1577_v20  ;;  %407 = vmatpush.msrb.mxu1 %v1586_v22 }
  0x41   :  { %480 = vmatpush.msrb.mxu2 %v1586_v22  ;;  %617 = vmatpush.msra.mxu0 %v1532_v7 }
  0x42   :  { %553 = vmatpush.msrb.mxu3 %v1586_v22  ;;  %408 = vmatpush.msrb.mxu1 %v1593_v23 }
  0x43   :  { %481 = vmatpush.msrb.mxu2 %v1593_v23  ;;  %618 = vmatpush.msra.mxu0 %v1537_v9 }
  0x44   :  { %554 = vmatpush.msrb.mxu3 %v1593_v23  ;;  %409 = vmatpush.msrb.mxu1 %v1598_v24 }
  0x45   :  { %482 = vmatpush.msrb.mxu2 %v1598_v24  ;;  %619 = vmatpush.msra.mxu0 %v1542_v11 }
  0x46   :  { %555 = vmatpush.msrb.mxu3 %v1598_v24  ;;  %410 = vmatpush.msrb.mxu1 %v1604_v25 }
  0x47   :  { %483 = vmatpush.msrb.mxu2 %v1604_v25  ;;  %620 = vmatpush.msra.mxu0 %v1547_v13 }
  0x48   :  { %556 = vmatpush.msrb.mxu3 %v1604_v25 }
  0x49   :  { %621 = vmatpush.msra.mxu0 %v1552_v15 }
  0x4b   :  { %622 = vmatpush.msra.mxu0 %v1560_v17  ;;  %v713_v17 = vlaneseq }
  0x4d   :  { %623 = vmatpush.msra.mxu0 %v1566_v18 }
  0x4f   :  { %624 = vmatpush.msra.mxu0 %v1571_v19  ;;  %v1736_v19 = vand.u32 127, %v713_v17 }
  0x51   :  { %625 = vmatpush.msra.mxu0 %v1577_v20  ;;  %vm718_vm12 = vcmp.ge.s32.totalorder %v1736_v19, 64  ;;  %vm719_vm13 = vcmp.lt.s32.totalorder %v1736_v19, 80  ;;  %vm715_vm14 = vcmp.lt.s32.totalorder %v1736_v19, 16 }
  0x52   :  { %vm720_vm15 = vmand %vm718_vm12, %vm719_vm13 }
  0x53   :  { %626 = vmatpush.msra.mxu0 %v1586_v22 }
  0x55   :  { %627 = vmatpush.msra.mxu0 %v1593_v23 }
  0x57   :  { %628 = vmatpush.msra.mxu0 %v1598_v24  ;;  %v1742_v24 = vsel %vm715_vm14, 1.0, %v1498_v26 }
  0x59   :  { %629 = vmatpush.msra.mxu0 %v1604_v25  ;;  %v1745_v25 = vsel %vm720_vm15, 1.0, %v1498_v26 }
  0x93   :  { %v96_v29 = vpop.f32.mrf.mxu0 }
  0x94   :  { %v97_v30 = vadd.f32 %v96_v29, %v71_v28 }
  0x96   :  { %v318_v31 = vrot.slane %v97_v30, 1  ;;  %v108_v35 = vrot.slane %v97_v30, 7  ;;  %v168_v36 = vrot.slane %v97_v30, 5  ;;  %v243_v41 = vrot.slane %v97_v30, 3 }
  0x98   :  { %v1695_v32 = vsel %vm72_vm0, %v97_v30, %v318_v31 }
  0x9b   :  { %v99_v33 = vpop.f32.mrf.mxu0 }
  0x9c   :  { %v100_v34 = vadd.f32 %v99_v33, %v71_v28 }
  0x9e   :  { %v104_v37 = vrot.slane %v100_v34, 7  ;;  %v109_v38 = vrot.slane %v100_v34, 6  ;;  %v169_v39 = vrot.slane %v100_v34, 4  ;;  %v244_v40 = vrot.slane %v100_v34, 2 }
  0x9f   :  { %v319_v42 = vsel %vm315_vm3, %v100_v34, %v318_v31 }
  0xa0   :  { %v106_v43 = vsel %vm105_vm1, %v104_v37, %v97_v30  ;;  %v110_v44 = vsel %vm105_vm1, %v109_v38, %v108_v35  ;;  %v166_v45 = vsel %vm165_vm2, %v104_v37, %v97_v30  ;;  %v170_v46 = vsel %vm165_vm2, %v169_v39, %v168_v36 }
  0xa1   :  { %v112_v47 = vsel %vm72_vm0, %v106_v43, %v110_v44  ;;  %v1704_v48 = vsel %vm72_vm0, %v166_v45, %v170_v46  ;;  %v241_v49 = vsel %vm240_vm4, %v104_v37, %v97_v30  ;;  %v245_v50 = vsel %vm240_vm4, %v244_v40, %v243_v41 }
  0xa2   :  { %v1709_v51 = vsel %vm72_vm0, %v241_v49, %v245_v50  ;;  %v316_v52 = vsel %vm315_vm3, %v104_v37, %v97_v30  ;;  %v390_v53 = vsel %vm389_vm5, %v104_v37, %v97_v30  ;;  %v392_v54 = vsel %vm389_vm5, %v109_v38, %v108_v35 }
  0xa3   :  { %v1715_v56 = vsel %vm72_vm0, %v316_v52, %v319_v42  ;;  %v1718_v57 = vsel %vm72_vm0, %v390_v53, %v392_v54  ;;  %v463_v58 = vsel %vm2049_vm6, %v104_v37, %v97_v30  ;;  %v465_v59 = vsel %vm2049_vm6, %v169_v39, %v168_v36 }
  0xa4   :  { %v130_v55 = vpop.f32.mrf.mxu1  ;;  %v1723_v61 = vsel %vm72_vm0, %v463_v58, %v465_v59  ;;  %v536_v62 = vsel %vm2048_vm7, %v104_v37, %v97_v30  ;;  %v538_v63 = vsel %vm2048_vm7, %v244_v40, %v243_v41  ;;  %v1731_v1 = vsel %vm72_vm0, %v104_v37, %v100_v34 }
  0xa5   :  { %v133_v60 = vadd.f32 %v130_v55, %v112_v47  ;;  %v1728_v0 = vsel %vm72_vm0, %v536_v62, %v538_v63 }
  0xa7   :  { %v1312_v2 = vmul.f32 -1.442695, %v133_v60 }
  0xa9   :  { %1340 = vpow2.f32 %v1312_v2 }
  0xaf   :  { %v1341_v3 = vpop.eup %1340 }
  0xb0   :  { %v137_v4 = vadd.f32 1.0, %v1341_v3 }
  0xb2   :  { %1342 = vrcp.f32 %v137_v4  ;;  %v149_v8 = vand.u32 2147483648, %v137_v4  ;;  %v147_v10 = vand.u32 2147483647, %v137_v4  ;;  %vm143_vm9 = vweird.f32 %v137_v4 }
  0xb3   :  { %1344 = vtanh.f32 %v133_v60 }
  0xb4   :  { %v150_v12 = vor.u32 1.1754944e-38, %v149_v8  ;;  %vm148_vm11 = vcmp.eq.f32.partialorder %v147_v10, 8.507059e+37 }
  0xb8   :  { %v1343_v5 = vpop.eup %1342 }
  0xb9   :  { %v139_v6 = vmul.f32 %v1343_v5, %v137_v4  ;;  %vm144_vm8 = vweird.f32 %v1343_v5  ;;  %v1345_v15 = vpop.eup %1344 }
  0xba   :  { %vm145_vm10 = vmor %vm143_vm9, %vm144_vm8 }
  0xbb   :  { %v140_v7 = vsub.f32 1.0, %v139_v6 }
  0xbd   :  { %v141_v9 = vmul.f32 %v1343_v5, %v140_v7 }
  0xbf   :  { %v142_v11 = vadd.f32 %v1343_v5, %v141_v9 }
  0xc1   :  { %v146_v13 = vsel %vm145_vm10, %v1343_v5, %v142_v11 }
  0xc2   :  { %v151_v14 = vsel %vm148_vm11, %v150_v12, %v146_v13 }
  0xc3   :  { %158 = vrot.lane.b32.xlu1 %v151_v14, %s1499_s0  ;;  %154 = vrot.lane.b32.xlu0 %v151_v14, %s1500_s19 }
  0xcb   :  { %156 = vrot.lane.b32.xlu0 %v1345_v15, %s1501_s20 }
 0x135   :  { %v155_v16 = vpop.permute.xlu0 %154  ;;  %v159_v28 = vpop.permute.xlu1 %158 }
 0x136   :  { %v160_v20 = vmul.f32 0.0, %v155_v16 }
 0x13d   :  { %v157_v18 = vpop.permute.xlu0 %156 }
 0x13e   :  { %v161_v21 = vmul.f32 %v157_v18, %v151_v14 }
 0x140   :  { %v162_v22 = vadd.f32 %v161_v21, %v160_v20 }
 0x142   :  { %1346 = vtanh.f32 %v162_v22 }
 0x148   :  { %v1347_v23 = vpop.eup %1346 }
 0x149   :  { %v164_v29 = vmul.f32 %v1347_v23, %v159_v28 }
 0x14b   :  { %189 = vmatmul.f32.vlgmr.msra.gmra.mxu2 %v164_v29  ;;  %v1748_v30 = vmul.f32 %v1742_v24, %v164_v29  ;;  %v1751_v31 = vmul.f32 %v1745_v25, %v164_v29 }
 0x1ce   :  { %v190_v33 = vpop.f32.mrf.mxu2 }
 0x1cf   :  { %v194_v34 = vrot.slane %v190_v33, 7 }
 0x1d1   :  { %v196_v35 = vadd.f32 %v194_v34, %v1704_v48 }
 0x1d3   :  { %v1313_v36 = vmul.f32 -1.442695, %v196_v35  ;;  %1348 = vtanh.f32 %v196_v35 }
 0x1d5   :  { %1350 = vpow2.f32 %v1313_v36 }
 0x1d9   :  { %v1349_v37 = vpop.eup %1348 }
 0x1da   :  { %v223_v38 = vrot.slane %v1349_v37, 1 }
 0x1db   :  { %v1351_v26 = vpop.eup %1350 }
 0x1dc   :  { %v200_v39 = vadd.f32 1.0, %v1351_v26  ;;  %225 = vrot.lane.b32.xlu1 %v223_v38, %s1501_s20 }
 0x1de   :  { %1352 = vrcp.f32 %v200_v39  ;;  %v212_v43 = vand.u32 2147483648, %v200_v39  ;;  %v210_v45 = vand.u32 2147483647, %v200_v39  ;;  %vm206_vm8 = vweird.f32 %v200_v39 }
 0x1e0   :  { %v213_v47 = vor.u32 1.1754944e-38, %v212_v43  ;;  %vm211_vm10 = vcmp.eq.f32.partialorder %v210_v45, 8.507059e+37 }
 0x1e4   :  { %v1353_v40 = vpop.eup %1352 }
 0x1e5   :  { %v202_v41 = vmul.f32 %v1353_v40, %v200_v39  ;;  %vm207_vm0 = vweird.f32 %v1353_v40 }
 0x1e6   :  { %vm208_vm9 = vmor %vm206_vm8, %vm207_vm0 }
 0x1e7   :  { %v203_v42 = vsub.f32 1.0, %v202_v41 }
 0x1e9   :  { %v204_v44 = vmul.f32 %v1353_v40, %v203_v42 }
 0x1eb   :  { %v205_v46 = vadd.f32 %v1353_v40, %v204_v44 }
 0x1ed   :  { %v209_v48 = vsel %vm208_vm9, %v1353_v40, %v205_v46 }
 0x1ee   :  { %v214_v49 = vsel %vm211_vm10, %v213_v47, %v209_v48 }
 0x1ef   :  { %v218_v50 = vrot.slane %v214_v49, 1 }
 0x1f1   :  { %220 = vrot.lane.b32.xlu2 %v218_v50, %s1500_s19 }
 0x1f9   :  { %227 = vrot.lane.b32.xlu2 %v218_v50, %s1499_s0 }
 0x24b   :  { %v221_v54 = vpop.permute.xlu2 %220 }
 0x24c   :  { %v229_v58 = vmul.f32 %v221_v54, %v162_v22 }
 0x24e   :  { %v226_v52 = vpop.permute.xlu1 %225 }
 0x24f   :  { %v231_v53 = vrot.slane %v226_v52, 7 }
 0x251   :  { %v233_v55 = vmul.f32 %v231_v53, %v214_v49 }
 0x253   :  { %v235_v59 = vrot.slane %v233_v55, 1  ;;  %v228_v63 = vpop.permute.xlu2 %227 }
 0x255   :  { %v237_v60 = vadd.f32 %v235_v59, %v229_v58 }
 0x257   :  { %1354 = vtanh.f32 %v237_v60 }
 0x25d   :  { %v1355_v62 = vpop.eup %1354 }
 0x25e   :  { %v239_v2 = vmul.f32 %v1355_v62, %v228_v63 }
 0x260   :  { %v1758_v3 = vmul.f32 %v1742_v24, %v239_v2  ;;  %v1761_v4 = vmul.f32 %v1745_v25, %v239_v2  ;;  %264 = vmatmul.f32.vlgmr.msra.gmra.mxu3 %v239_v2 }
 0x2e3   :  { %v265_v5 = vpop.f32.mrf.mxu3 }
 0x2e4   :  { %v269_v6 = vrot.slane %v265_v5, 6 }
 0x2e6   :  { %v271_v7 = vadd.f32 %v269_v6, %v1709_v51 }
 0x2e8   :  { %v1314_v8 = vmul.f32 -1.442695, %v271_v7  ;;  %1356 = vtanh.f32 %v271_v7 }
 0x2ea   :  { %1358 = vpow2.f32 %v1314_v8 }
 0x2ee   :  { %v1357_v9 = vpop.eup %1356 }
 0x2ef   :  { %v298_v10 = vrot.slane %v1357_v9, 2 }
 0x2f0   :  { %v1359_v11 = vpop.eup %1358 }
 0x2f1   :  { %v275_v12 = vadd.f32 1.0, %v1359_v11  ;;  %300 = vrot.lane.b32.xlu0 %v298_v10, %s1501_s20 }
 0x2f3   :  { %1360 = vrcp.f32 %v275_v12  ;;  %v287_v16 = vand.u32 2147483648, %v275_v12  ;;  %v285_v18 = vand.u32 2147483647, %v275_v12  ;;  %vm281_vm12 = vweird.f32 %v275_v12 }
 0x2f5   :  { %v288_v51 = vor.u32 1.1754944e-38, %v287_v16  ;;  %vm286_vm14 = vcmp.eq.f32.partialorder %v285_v18, 8.507059e+37 }
 0x2f9   :  { %v1361_v13 = vpop.eup %1360 }
 0x2fa   :  { %v277_v14 = vmul.f32 %v1361_v13, %v275_v12  ;;  %vm282_vm11 = vweird.f32 %v1361_v13 }
 0x2fb   :  { %vm283_vm13 = vmor %vm281_vm12, %vm282_vm11 }
 0x2fc   :  { %v278_v15 = vsub.f32 1.0, %v277_v14 }
 0x2fe   :  { %v279_v17 = vmul.f32 %v1361_v13, %v278_v15 }
 0x300   :  { %v280_v20 = vadd.f32 %v1361_v13, %v279_v17 }
 0x302   :  { %v284_v21 = vsel %vm283_vm13, %v1361_v13, %v280_v20 }
 0x303   :  { %v289_v22 = vsel %vm286_vm14, %v288_v51, %v284_v21 }
 0x304   :  { %v293_v23 = vrot.slane %v289_v22, 2 }
 0x306   :  { %302 = vrot.lane.b32.xlu2 %v293_v23, %s1499_s0  ;;  %295 = vrot.lane.b32.xlu1 %v293_v23, %s1500_s19 }
 0x360   :  { %v303_v26 = vpop.permute.xlu2 %302 }
 0x363   :  { %v301_v28 = vpop.permute.xlu0 %300 }
 0x364   :  { %v306_v29 = vrot.slane %v301_v28, 6 }
 0x366   :  { %v308_v33 = vmul.f32 %v306_v29, %v289_v22 }
 0x368   :  { %v310_v35 = vrot.slane %v308_v33, 2 }
 0x378   :  { %v296_v34 = vpop.permute.xlu1 %295 }
 0x379   :  { %v304_v36 = vmul.f32 %v296_v34, %v237_v60 }
 0x37b   :  { %v312_v37 = vadd.f32 %v310_v35, %v304_v36 }
 0x37d   :  { %1362 = vtanh.f32 %v312_v37 }
 0x383   :  { %v1363_v38 = vpop.eup %1362 }
 0x384   :  { %v314_v39 = vmul.f32 %v1363_v38, %v303_v26 }
 0x386   :  { %338 = vmatmul.f32.vlgmr.msrb.gmra.mxu0 %v314_v39  ;;  %v1768_v40 = vmul.f32 %v1742_v24, %v314_v39  ;;  %v1771_v41 = vmul.f32 %v1745_v25, %v314_v39 }
 0x403   :  { %v339_v42 = vpop.f32.mrf.mxu0 }
 0x404   :  { %v343_v43 = vrot.slane %v339_v42, 5 }
 0x406   :  { %v345_v44 = vadd.f32 %v343_v43, %v1715_v56 }
 0x408   :  { %v1315_v45 = vmul.f32 -1.442695, %v345_v44  ;;  %1364 = vtanh.f32 %v345_v44 }
 0x40a   :  { %1366 = vpow2.f32 %v1315_v45 }
 0x40e   :  { %v1365_v46 = vpop.eup %1364 }
 0x40f   :  { %v372_v47 = vrot.slane %v1365_v46, 3 }
 0x410   :  { %v1367_v48 = vpop.eup %1366 }
 0x411   :  { %v349_v49 = vadd.f32 1.0, %v1367_v48  ;;  %374 = vrot.lane.b32.xlu0 %v372_v47, %s1501_s20 }
 0x413   :  { %1368 = vrcp.f32 %v349_v49  ;;  %v361_v54 = vand.u32 2147483648, %v349_v49  ;;  %v359_v58 = vand.u32 2147483647, %v349_v49  ;;  %vm355_vm0 = vweird.f32 %v349_v49 }
 0x415   :  { %v362_v56 = vor.u32 1.1754944e-38, %v361_v54  ;;  %vm360_vm9 = vcmp.eq.f32.partialorder %v359_v58, 8.507059e+37 }
 0x419   :  { %v1369_v50 = vpop.eup %1368 }
 0x41a   :  { %v351_v52 = vmul.f32 %v1369_v50, %v349_v49  ;;  %vm356_vm15 = vweird.f32 %v1369_v50 }
 0x41b   :  { %vm357_vm8 = vmor %vm355_vm0, %vm356_vm15 }
 0x41c   :  { %v352_v53 = vsub.f32 1.0, %v351_v52 }
 0x41e   :  { %v353_v55 = vmul.f32 %v1369_v50, %v352_v53 }
 0x420   :  { %v354_v59 = vadd.f32 %v1369_v50, %v353_v55 }
 0x422   :  { %v358_v60 = vsel %vm357_vm8, %v1369_v50, %v354_v59 }
 0x423   :  { %v363_v62 = vsel %vm360_vm9, %v362_v56, %v358_v60  ;;  %vm765_vm9 = vcmask 1041408  }
 0x424   :  { %v367_v63 = vrot.slane %v363_v62, 3 }
 0x426   :  { %376 = vrot.lane.b32.xlu2 %v367_v63, %s1499_s0  ;;  %369 = vrot.lane.b32.xlu1 %v367_v63, %s1500_s19 }
 0x480   :  { %v377_v12 = vpop.permute.xlu2 %376 }
 0x483   :  { %v375_v2 = vpop.permute.xlu0 %374 }
 0x484   :  { %v380_v5 = vrot.slane %v375_v2, 5 }
 0x486   :  { %v382_v6 = vmul.f32 %v380_v5, %v363_v62 }
 0x488   :  { %v384_v8 = vrot.slane %v382_v6, 3 }
 0x498   :  { %v370_v7 = vpop.permute.xlu1 %369 }
 0x499   :  { %v378_v9 = vmul.f32 %v370_v7, %v312_v37 }
 0x49b   :  { %v386_v10 = vadd.f32 %v384_v8, %v378_v9 }
 0x49d   :  { %1370 = vtanh.f32 %v386_v10 }
 0x4a3   :  { %v1371_v11 = vpop.eup %1370 }
 0x4a4   :  { %v388_v13 = vmul.f32 %v1371_v11, %v377_v12 }
 0x4a6   :  { %411 = vmatmul.f32.vlgmr.msrb.gmra.mxu1 %v388_v13  ;;  %v732_v14 = vmul.f32 %v1742_v24, %v388_v13  ;;  %v736_v15 = vmul.f32 %v1745_v25, %v388_v13 }
 0x523   :  { %v412_v16 = vpop.f32.mrf.mxu1 }
 0x524   :  { %v416_v17 = vrot.slane %v412_v16, 4 }
 0x526   :  { %v418_v18 = vadd.f32 %v416_v17, %v1718_v57 }
 0x528   :  { %v1316_v20 = vmul.f32 -1.442695, %v418_v18  ;;  %1372 = vtanh.f32 %v418_v18 }
 0x52a   :  { %1374 = vpow2.f32 %v1316_v20 }
 0x52e   :  { %v1373_v51 = vpop.eup %1372 }
 0x52f   :  { %v445_v21 = vrot.slane %v1373_v51, 4 }
 0x530   :  { %v1375_v22 = vpop.eup %1374 }
 0x531   :  { %v422_v23 = vadd.f32 1.0, %v1375_v22  ;;  %447 = vrot.lane.b32.xlu0 %v445_v21, %s1501_s20 }
 0x533   :  { %1376 = vrcp.f32 %v422_v23  ;;  %v434_v34 = vand.u32 2147483648, %v422_v23  ;;  %v432_v36 = vand.u32 2147483647, %v422_v23  ;;  %vm428_vm11 = vweird.f32 %v422_v23 }
 0x535   :  { %v435_v57 = vor.u32 1.1754944e-38, %v434_v34  ;;  %vm433_vm13 = vcmp.eq.f32.partialorder %v432_v36, 8.507059e+37 }
 0x539   :  { %v1377_v28 = vpop.eup %1376 }
 0x53a   :  { %v424_v29 = vmul.f32 %v1377_v28, %v422_v23  ;;  %vm429_vm10 = vweird.f32 %v1377_v28 }
 0x53b   :  { %vm430_vm12 = vmor %vm428_vm11, %vm429_vm10 }
 0x53c   :  { %v425_v33 = vsub.f32 1.0, %v424_v29 }
 0x53e   :  { %v426_v35 = vmul.f32 %v1377_v28, %v425_v33 }
 0x540   :  { %v427_v37 = vadd.f32 %v1377_v28, %v426_v35 }
 0x542   :  { %v431_v38 = vsel %vm430_vm12, %v1377_v28, %v427_v37 }
 0x543   :  { %v436_v26 = vsel %vm433_vm13, %v435_v57, %v431_v38 }
 0x544   :  { %v440_v39 = vrot.slane %v436_v26, 4 }
 0x546   :  { %449 = vrot.lane.b32.xlu2 %v440_v39, %s1499_s0  ;;  %442 = vrot.lane.b32.xlu1 %v440_v39, %s1500_s19 }
 0x5a0   :  { %v450_v50 = vpop.permute.xlu2 %449 }
 0x5a3   :  { %v448_v42 = vpop.permute.xlu0 %447 }
 0x5a4   :  { %v453_v43 = vrot.slane %v448_v42, 4 }
 0x5a6   :  { %v455_v44 = vmul.f32 %v453_v43, %v436_v26 }
 0x5a8   :  { %v457_v46 = vrot.slane %v455_v44, 4 }
 0x5b8   :  { %v443_v45 = vpop.permute.xlu1 %442 }
 0x5b9   :  { %v451_v47 = vmul.f32 %v443_v45, %v386_v10 }
 0x5bb   :  { %v459_v48 = vadd.f32 %v457_v46, %v451_v47 }
 0x5bd   :  { %1378 = vtanh.f32 %v459_v48 }
 0x5c3   :  { %v1379_v49 = vpop.eup %1378 }
 0x5c4   :  { %v461_v52 = vmul.f32 %v1379_v49, %v450_v50 }
 0x5c6   :  { %484 = vmatmul.f32.vlgmr.msrb.gmra.mxu2 %v461_v52  ;;  %v733_v53 = vmul.f32 %v1745_v25, %v461_v52  ;;  %v735_v54 = vmul.f32 %v1742_v24, %v461_v52 }
 0x5c8   :  { %v737_v55 = vadd.f32 %v736_v15, %v735_v54  ;;  %v1785_v58 = vadd.f32 %v733_v53, %v732_v14 }
 0x649   :  { %v485_v59 = vpop.f32.mrf.mxu2 }
 0x64a   :  { %v489_v56 = vrot.slane %v485_v59, 3 }
 0x64c   :  { %v491_v60 = vadd.f32 %v489_v56, %v1723_v61 }
 0x64e   :  { %v1317_v62 = vmul.f32 -1.442695, %v491_v60  ;;  %1380 = vtanh.f32 %v491_v60 }
 0x650   :  { %1382 = vpow2.f32 %v1317_v62 }
 0x654   :  { %v1381_v63 = vpop.eup %1380 }
 0x655   :  { %v518_v2 = vrot.slane %v1381_v63, 5 }
 0x656   :  { %v1383_v5 = vpop.eup %1382 }
 0x657   :  { %v495_v6 = vadd.f32 1.0, %v1383_v5  ;;  %520 = vrot.lane.b32.xlu0 %v518_v2, %s1501_s20 }
 0x659   :  { %1384 = vrcp.f32 %v495_v6  ;;  %v507_v10 = vand.u32 2147483648, %v495_v6  ;;  %v505_v12 = vand.u32 2147483647, %v495_v6  ;;  %vm501_vm15 = vweird.f32 %v495_v6 }
 0x65b   :  { %v508_v61 = vor.u32 1.1754944e-38, %v507_v10  ;;  %vm506_vm8 = vcmp.eq.f32.partialorder %v505_v12, 8.507059e+37 }
 0x65f   :  { %v1385_v7 = vpop.eup %1384 }
 0x660   :  { %v497_v8 = vmul.f32 %v1385_v7, %v495_v6  ;;  %vm502_vm14 = vweird.f32 %v1385_v7 }
 0x661   :  { %vm503_vm0 = vmor %vm501_vm15, %vm502_vm14  ;;  %vm767_vm14 = vcmask 1043456   ;;  %vm681_vm15 = vcmask 1040384  }
 0x662   :  { %v498_v9 = vsub.f32 1.0, %v497_v8 }
 0x664   :  { %v499_v11 = vmul.f32 %v1385_v7, %v498_v9 }
 0x666   :  { %v500_v13 = vadd.f32 %v1385_v7, %v499_v11 }
 0x668   :  { %v504_v14 = vsel %vm503_vm0, %v1385_v7, %v500_v13 }
 0x669   :  { %v509_v15 = vsel %vm506_vm8, %v508_v61, %v504_v14 }
 0x66a   :  { %v513_v16 = vrot.slane %v509_v15, 5 }
 0x66c   :  { %522 = vrot.lane.b32.xlu2 %v513_v16, %s1499_s0  ;;  %515 = vrot.lane.b32.xlu1 %v513_v16, %s1500_s19 }
 0x6c6   :  { %v523_v29 = vpop.permute.xlu2 %522 }
 0x6c9   :  { %v521_v17 = vpop.permute.xlu0 %520 }
 0x6ca   :  { %v526_v18 = vrot.slane %v521_v17, 3 }
 0x6cc   :  { %v528_v20 = vmul.f32 %v526_v18, %v509_v15 }
 0x6ce   :  { %v530_v21 = vrot.slane %v528_v20, 5 }
 0x6de   :  { %v516_v51 = vpop.permute.xlu1 %515 }
 0x6df   :  { %v524_v22 = vmul.f32 %v516_v51, %v459_v48 }
 0x6e1   :  { %v532_v23 = vadd.f32 %v530_v21, %v524_v22 }
 0x6e3   :  { %1386 = vtanh.f32 %v532_v23 }
 0x6e9   :  { %v1387_v28 = vpop.eup %1386 }
 0x6ea   :  { %v534_v33 = vmul.f32 %v1387_v28, %v523_v29 }
 0x6ec   :  { %557 = vmatmul.f32.vlgmr.msrb.gmra.mxu3 %v534_v33  ;;  %v730_v34 = vmul.f32 %v1745_v25, %v534_v33  ;;  %v738_v35 = vmul.f32 %v1742_v24, %v534_v33 }
 0x6ee   :  { %v740_v36 = vadd.f32 %v1771_v41, %v738_v35  ;;  %v1795_v37 = vadd.f32 %v730_v34, %v1768_v40 }
 0x6f0   :  { %v757_v57 = vrot.slane %v740_v36, 6 }
 0x6f2   :  { %v771_v38 = vsel %vm765_vm9, %v737_v55, %v757_v57 }
 0x76f   :  { %v558_v26 = vpop.f32.mrf.mxu3 }
 0x770   :  { %v562_v39 = vrot.slane %v558_v26, 2 }
 0x772   :  { %v564_v42 = vadd.f32 %v562_v39, %v1728_v0 }
 0x774   :  { %v1318_v43 = vmul.f32 -1.442695, %v564_v42  ;;  %1388 = vtanh.f32 %v564_v42 }
 0x776   :  { %1390 = vpow2.f32 %v1318_v43 }
 0x77a   :  { %v1389_v44 = vpop.eup %1388 }
 0x77b   :  { %v591_v45 = vrot.slane %v1389_v44, 6 }
 0x77c   :  { %v1391_v46 = vpop.eup %1390 }
 0x77d   :  { %v568_v47 = vadd.f32 1.0, %v1391_v46  ;;  %593 = vrot.lane.b32.xlu0 %v591_v45, %s1501_s20 }
 0x77f   :  { %1392 = vrcp.f32 %v568_v47  ;;  %v580_v49 = vand.u32 2147483648, %v568_v47  ;;  %v578_v52 = vand.u32 2147483647, %v568_v47  ;;  %vm574_vm11 = vweird.f32 %v568_v47 }
 0x781   :  { %v581_v0 = vor.u32 1.1754944e-38, %v580_v49  ;;  %vm579_vm13 = vcmp.eq.f32.partialorder %v578_v52, 8.507059e+37 }
 0x785   :  { %v1393_v40 = vpop.eup %1392 }
 0x786   :  { %v570_v41 = vmul.f32 %v1393_v40, %v568_v47  ;;  %vm575_vm10 = vweird.f32 %v1393_v40 }
 0x787   :  { %vm576_vm12 = vmor %vm574_vm11, %vm575_vm10 }
 0x788   :  { %v571_v48 = vsub.f32 1.0, %v570_v41 }
 0x78a   :  { %v572_v50 = vmul.f32 %v1393_v40, %v571_v48 }
 0x78c   :  { %v573_v53 = vadd.f32 %v1393_v40, %v572_v50 }
 0x78e   :  { %v577_v54 = vsel %vm576_vm12, %v1393_v40, %v573_v53 }
 0x78f   :  { %v582_v55 = vsel %vm579_vm13, %v581_v0, %v577_v54 }
 0x790   :  { %v586_v59 = vrot.slane %v582_v55, 6 }
 0x792   :  { %595 = vrot.lane.b32.xlu2 %v586_v59, %s1499_s0  ;;  %588 = vrot.lane.b32.xlu1 %v586_v59, %s1500_s19  ;;  %v55_v59 = vld [vmem:[#allocation2 + $0xd8] sm:$0xff] }
 0x793   :  { %804 = vmatpush.msra.mxu1 %v55_v59 }
 0x7ec   :  { %v596_v8 = vpop.permute.xlu2 %595 }
 0x7ef   :  { %v594_v56 = vpop.permute.xlu0 %593 }
 0x7f0   :  { %v599_v60 = vrot.slane %v594_v56, 2  ;;  %v59_v56 = vld [vmem:[#allocation2 + $0xf8] sm:$0xff] }
 0x7f1   :  { %830 = vmatpush.msra.mxu2 %v59_v56 }
 0x7f2   :  { %v601_v62 = vmul.f32 %v599_v60, %v582_v55  ;;  %v54_v60 = vld [vmem:[#allocation2 + $0xd0] sm:$0xff] }
 0x7f3   :  { %805 = vmatpush.msra.mxu1 %v54_v60 }
 0x7f4   :  { %v603_v2 = vrot.slane %v601_v62, 6 }
 0x804   :  { %v589_v63 = vpop.permute.xlu1 %588 }
 0x805   :  { %v597_v5 = vmul.f32 %v589_v63, %v532_v23  ;;  %v58_v63 = vld [vmem:[#allocation2 + $0xf0] sm:$0xff] }
 0x806   :  { %831 = vmatpush.msra.mxu2 %v58_v63 }
 0x807   :  { %v1802_v6 = vadd.f32 %v603_v2, %v597_v5  ;;  %v53_v2 = vld [vmem:[#allocation2 + $0xc8] sm:$0xff] }
 0x808   :  { %v57_v5 = vld [vmem:[#allocation2 + $0xe8] sm:$0xff]  ;;  %806 = vmatpush.msra.mxu1 %v53_v2 }
 0x809   :  { %1394 = vtanh.f32 %v1802_v6  ;;  %832 = vmatpush.msra.mxu2 %v57_v5 }
 0x80f   :  { %v1395_v7 = vpop.eup %1394 }
 0x810   :  { %v607_v9 = vmul.f32 %v1395_v7, %v596_v8 }
 0x812   :  { %630 = vmatmul.f32.vlgmr.msra.gmra.mxu0 %v607_v9  ;;  %v727_v10 = vmul.f32 %v1745_v25, %v607_v9  ;;  %v741_v11 = vmul.f32 %v1742_v24, %v607_v9 }
 0x814   :  { %v743_v12 = vadd.f32 %v1761_v4, %v741_v11  ;;  %v1809_v13 = vadd.f32 %v727_v10, %v1758_v3 }
 0x816   :  { %v760_v61 = vrot.slane %v743_v12, 4 }
 0x818   :  { %v1812_v14 = vsel %vm767_vm14, %v771_v38, %v760_v61 }
 0x88f   :  { %v631_v15 = vpop.f32.mrf.mxu0 }
 0x890   :  { %v635_v16 = vrot.slane %v631_v15, 1 }
 0x892   :  { %v637_v17 = vadd.f32 %v635_v16, %v1695_v32  ;;  %v638_v18 = vadd.f32 %v635_v16, %v1731_v1 }
 0x894   :  { %v1319_v20 = vmul.f32 -1.442695, %v637_v17  ;;  %v1320_v51 = vmul.f32 -1.442695, %v638_v18  ;;  %1396 = vtanh.f32 %v637_v17 }
 0x895   :  { %1398 = vtanh.f32 %v638_v18 }
 0x896   :  { %1400 = vpow2.f32 %v1319_v20 }
 0x897   :  { %1402 = vpow2.f32 %v1320_v51 }
 0x89a   :  { %v1397_v4 = vpop.eup %1396 }
 0x89b   :  { %v1399_v3 = vpop.eup %1398  ;;  %v690_v21 = vrot.slane %v1397_v4, 7 }
 0x89c   :  { %v1401_v22 = vpop.eup %1400  ;;  %v691_v23 = vrot.slane %v1399_v3, 7 }
 0x89d   :  { %v1403_v28 = vpop.eup %1402  ;;  %v645_v29 = vadd.f32 1.0, %v1401_v22 }
 0x89e   :  { %v646_v33 = vadd.f32 1.0, %v1403_v28  ;;  %v692_v34 = vsel %vm681_vm15, %v690_v21, %v691_v23  ;;  %v748_v21 = vrot.slane %v1809_v13, 6  ;;  %v754_v23 = vrot.slane %v1785_v58, 2 }
 0x89f   :  { %1404 = vrcp.f32 %v645_v29  ;;  %694 = vrot.lane.b32.xlu0 %v692_v34, %s1501_s20  ;;  %v658_v38 = vand.u32 2147483648, %v645_v29  ;;  %v656_v42 = vand.u32 2147483647, %v645_v29  ;;  %vm652_vm10 = vweird.f32 %v645_v29 }
 0x8a0   :  { %1406 = vrcp.f32 %v646_v33  ;;  %v673_v43 = vand.u32 2147483648, %v646_v33  ;;  %v671_v45 = vand.u32 2147483647, %v646_v33  ;;  %vm667_vm12 = vweird.f32 %v646_v33 }
 0x8a1   :  { %v659_v47 = vor.u32 1.1754944e-38, %v658_v38  ;;  %vm657_vm13 = vcmp.eq.f32.partialorder %v656_v42, 8.507059e+37 }
 0x8a2   :  { %v674_v48 = vor.u32 1.1754944e-38, %v673_v43  ;;  %vm672_vm6 = vcmp.eq.f32.partialorder %v671_v45, 8.507059e+37 }
 0x8a5   :  { %v1405_v32 = vpop.eup %1404 }
 0x8a6   :  { %v1407_v1 = vpop.eup %1406  ;;  %v648_v35 = vmul.f32 %v1405_v32, %v645_v29  ;;  %vm653_vm0 = vweird.f32 %v1405_v32 }
 0x8a7   :  { %v663_v36 = vmul.f32 %v1407_v1, %v646_v33  ;;  %vm668_vm8 = vweird.f32 %v1407_v1  ;;  %vm654_vm11 = vmor %vm652_vm10, %vm653_vm0  ;;  %vm2051_vm0 = vcmask 1047559  }
 0x8a8   :  { %v649_v57 = vsub.f32 1.0, %v648_v35  ;;  %vm669_vm7 = vmor %vm667_vm12, %vm668_vm8 }
 0x8a9   :  { %v664_v26 = vsub.f32 1.0, %v663_v36  ;;  %vm2053_vm8 = vmmov %vm2051_vm0 }
 0x8aa   :  { %v650_v39 = vmul.f32 %v1405_v32, %v649_v57 }
 0x8ab   :  { %v665_v44 = vmul.f32 %v1407_v1, %v664_v26 }
 0x8ac   :  { %v651_v46 = vadd.f32 %v1405_v32, %v650_v39 }
 0x8ad   :  { %v666_v40 = vadd.f32 %v1407_v1, %v665_v44 }
 0x8ae   :  { %v655_v41 = vsel %vm654_vm11, %v1405_v32, %v651_v46  ;;  %v860_v32 = vperm.slane %v1691_v27, 1  ;;  %v877_v46 = vperm.slane %v1691_v27, 2 }
 0x8af   :  { %v660_v49 = vsel %vm657_vm13, %v659_v47, %v655_v41  ;;  %v670_v50 = vsel %vm669_vm7, %v1407_v1, %v666_v40  ;;  %vm782_vm7 = vcmask 130048  }
 0x8b0   :  { %v675_v52 = vsel %vm672_vm6, %v674_v48, %v670_v50  ;;  %v682_v53 = vrot.slane %v660_v49, 7  ;;  %vm769_vm6 = vcmask 1045504  }
 0x8b1   :  { %v683_v0 = vrot.slane %v675_v52, 7 }
 0x8b3   :  { %v684_v54 = vsel %vm681_vm15, %v682_v53, %v683_v0 }
 0x8b4   :  { %696 = vrot.lane.b32.xlu2 %v684_v54, %s1499_s0  ;;  %686 = vrot.lane.b32.xlu1 %v684_v54, %s1500_s19 }
 0x90e   :  { %v697_v17 = vpop.permute.xlu2 %696 }
 0x911   :  { %v695_v55 = vpop.permute.xlu0 %694 }
 0x912   :  { %v700_v62 = vrot.slane %v695_v55, 1 }
 0x914   :  { %v702_v7 = vmul.f32 %v700_v62, %v660_v49  ;;  %v703_v8 = vmul.f32 %v700_v62, %v675_v52 }
 0x916   :  { %v706_v9 = vrot.slane %v702_v7, 7  ;;  %v707_v10 = vrot.slane %v703_v8, 7 }
 0x918   :  { %v708_v61 = vsel %vm681_vm15, %v706_v9, %v707_v10  ;;  %vm785_vm15 = vcmask 261120  }
 0x926   :  { %v687_v11 = vpop.permute.xlu1 %686 }
 0x927   :  { %v698_v12 = vmul.f32 %v687_v11, %v1802_v6  ;;  %v751_v6 = vrot.slane %v1795_v37, 4 }
 0x929   :  { %v710_v15 = vadd.f32 %v708_v61, %v698_v12 }
 0x92b   :  { %1408 = vtanh.f32 %v710_v15 }
 0x931   :  { %v1409_v16 = vpop.eup %1408 }
 0x932   :  { %v712_v18 = vmul.f32 %v1409_v16, %v697_v17 }
 0x934   :  { %v724_v20 = vmul.f32 %v1745_v25, %v712_v18  ;;  %v744_v51 = vmul.f32 %v1742_v24, %v712_v18  ;;  %v52_v24 = vld [vmem:[#allocation2 + $0xc0] sm:$0xff] }
 0x935   :  { %807 = vmatpush.msra.mxu1 %v52_v24 }
 0x936   :  { %v746_v4 = vadd.f32 %v1751_v31, %v744_v51  ;;  %v725_v3 = vadd.f32 %v724_v20, %v1748_v30  ;;  %v56_v30 = vld [vmem:[#allocation2 + $0xe0] sm:$0xff] }
 0x937   :  { %833 = vmatpush.msra.mxu2 %v56_v30 }
 0x938   :  { %v763_v22 = vrot.slane %v746_v4, 2  ;;  %v766_v28 = vsel %vm765_vm9, %v725_v3, %v748_v21 }
 0x939   :  { %v768_v29 = vsel %vm767_vm14, %v766_v28, %v751_v6  ;;  %vm2050_vm14 = vcmask 1046534  }
 0x93a   :  { %v773_v25 = vsel %vm769_vm6, %v1812_v14, %v763_v22  ;;  %v770_v33 = vsel %vm769_vm6, %v768_v29, %v754_v23 }
 0x93b   :  { %778 = vrot.lane.b32.xlu0 %v773_v25, %s1499_s0  ;;  %776 = vrot.lane.b32.xlu1 %v770_v33, %s1499_s0 }
 0x9ad   :  { %v779_v31 = vpop.permute.xlu0 %778  ;;  %v777_v37 = vpop.permute.xlu1 %776 }
 0x9ae   :  { %v1835_v58 = vsel %vm782_vm7, %v773_v25, %v779_v31  ;;  %v1837_v13 = vsel %vm782_vm7, %v770_v33, %v777_v37 }
 0x9af   :  { %v815_v34 = vrot.slane %v1835_v58, 6  ;;  %1323 = vmatmul.msk.f32.vlgmr.msra.gmra.mxu1 %vm785_vm15, %v1837_v13 }
 0x9b1   :  { %1325 = vmatmul.msk.f32.vlgmr.msra.gmra.mxu2 %vm785_vm15, %v815_v34 }
 0x9b7   :  { %1324 = vmatmul.msk.f32.gmra.mxu1 %vm785_vm15, %v1835_v58 }
 0xa2c   :  { %v809_v14 = vpop.f32.mrf.mxu1 }
 0xa2d   :  { %v840_v1 = vrot.slane %v809_v14, 2  ;;  %v841_v35 = vrot.slane %v809_v14, 4  ;;  %v842_v36 = vrot.slane %v809_v14, 6 }
 0xa34   :  { %v812_v57 = vpop.f32.mrf.mxu1  ;;  %v835_v38 = vpop.f32.mrf.mxu2 }
 0xa35   :  { %v843_v26 = vrot.slane %v812_v57, 2  ;;  %v844_v39 = vrot.slane %v812_v57, 4  ;;  %v852_v42 = vadd.f32 %v835_v38, %v809_v14  ;;  %v854_v43 = vadd.f32 %v841_v35, %v835_v38 }
 0xa36   :  { %v853_v44 = vadd.f32 %v840_v1, %v835_v38  ;;  %v855_v45 = vadd.f32 %v842_v36, %v835_v38  ;;  %v856_v2 = vadd.f32 %v835_v38, %v812_v57  ;;  %v845_v9 = vrot.slane %v812_v57, 6 }
 0xa37   :  { %v861_v47 = vadd.f32 %v860_v32, %v852_v42  ;;  %v858_v40 = vadd.f32 %v844_v39, %v835_v38  ;;  %v857_v41 = vadd.f32 %v843_v26, %v835_v38  ;;  %v863_v48 = vadd.f32 %v860_v32, %v854_v43 }
 0xa38   :  { %v862_v49 = vadd.f32 %v860_v32, %v853_v44  ;;  %v864_v52 = vadd.f32 %v860_v32, %v855_v45  ;;  %v865_v11 = vadd.f32 %v860_v32, %v856_v2  ;;  %v859_v17 = vadd.f32 %v845_v9, %v835_v38 }
 0xa39   :  { %v869_v50 = vmax.f32 %v861_v47, 0.0  ;;  %v871_v53 = vmax.f32 %v863_v48, 0.0  ;;  %v867_v54 = vadd.f32 %v860_v32, %v858_v40  ;;  %v866_v55 = vadd.f32 %v860_v32, %v857_v41 }
 0xa3a   :  { %v870_v0 = vmax.f32 %v862_v49, 0.0  ;;  %v872_v63 = vmax.f32 %v864_v52, 0.0  ;;  %v873_v16 = vmax.f32 %v865_v11, 0.0  ;;  %v868_v4 = vadd.f32 %v860_v32, %v859_v17 }
 0xa3b   :  { %v878_v59 = vmul.f32 %v877_v46, %v869_v50  ;;  %v880_v56 = vmul.f32 %v877_v46, %v871_v53  ;;  %v875_v7 = vmax.f32 %v867_v54, 0.0  ;;  %v874_v8 = vmax.f32 %v866_v55, 0.0 }
 0xa3c   :  { %v879_v60 = vmul.f32 %v877_v46, %v870_v0  ;;  %v881_v10 = vmul.f32 %v877_v46, %v872_v63  ;;  %v882_v51 = vmul.f32 %v877_v46, %v873_v16  ;;  %v876_v21 = vmax.f32 %v868_v4, 0.0 }
 0xa3d   :  { %v886_v62 = vsel %vm765_vm9, %v878_v59, 0.0  ;;  %v892_v27 = vsel %vm765_vm9, %v880_v56, 0.0  ;;  %v884_v12 = vmul.f32 %v877_v46, %v875_v7  ;;  %v883_v61 = vmul.f32 %v877_v46, %v874_v8 }
 0xa3e   :  { %887 = vadd.xlane.f32.xlu2 %v886_v62  ;;  %v889_v5 = vsel %vm765_vm9, %v879_v60, 0.0  ;;  %893 = vadd.xlane.f32.xlu1 %v892_v27  ;;  %v895_v15 = vsel %vm765_vm9, %v881_v10, 0.0  ;;  %v898_v3 = vsel %vm765_vm9, %v882_v51, 0.0  ;;  %v885_v6 = vmul.f32 %v877_v46, %v876_v21 }
 0xa3f   :  { %890 = vadd.xlane.f32.xlu0 %v889_v5  ;;  %v904_v18 = vsel %vm765_vm9, %v884_v12, 0.0  ;;  %v901_v20 = vsel %vm765_vm9, %v883_v61, 0.0  ;;  %v1502_v40 = vmov 0  }
 0xa40   :  { %v907_v22 = vsel %vm765_vm9, %v885_v6, 0.0  ;;  %vm934_vm9 = vcmask 15360   ;;  %1339 = vset.pattern.permute.xlu0 %v1502_v40  ;;  %1338 = vset.pattern.permute.xlu2 %v1502_v40 }
 0xa41   :  { %1337 = vset.pattern.permute.xlu1 %v1502_v40 }
 0xa46   :  { %896 = vadd.xlane.f32.xlu2 %v895_v15  ;;  %905 = vadd.xlane.f32.xlu1 %v904_v18 }
 0xa47   :  { %902 = vadd.xlane.f32.xlu0 %v901_v20 }
 0xa4e   :  { %899 = vadd.xlane.f32.xlu2 %v898_v3 }
 0xa56   :  { %908 = vadd.xlane.f32.xlu2 %v907_v22 }
 0xab1   :  { %v888_v23 = vpop.xlane.xlu2 %887  ;;  %v894_v33 = vpop.xlane.xlu1 %893 }
 0xab2   :  { %v891_v28 = vpop.xlane.xlu0 %890  ;;  %v918_v25 = vperm.slane %v888_v23, %v1736_v19  ;;  %v920_v30 = vperm.slane %v894_v33, %v1736_v19 }
 0xab3   :  { %v919_v24 = vperm.slane %v891_v28, %v1736_v19 }
 0xab5   :  { %v926_v31 = vsel %vm105_vm1, %v919_v24, %v918_v25 }
 0xab6   :  { %v927_v1 = vsel %vm165_vm2, %v920_v30, %v926_v31 }
 0xab9   :  { %v897_v29 = vpop.xlane.xlu2 %896  ;;  %v906_v38 = vpop.xlane.xlu1 %905 }
 0xaba   :  { %v921_v37 = vperm.slane %v897_v29, %v1736_v19  ;;  %v903_v35 = vpop.xlane.xlu0 %902  ;;  %v924_v42 = vperm.slane %v906_v38, %v1736_v19 }
 0xabb   :  { %v923_v26 = vperm.slane %v903_v35, %v1736_v19 }
 0xabc   :  { %v928_v36 = vsel %vm240_vm4, %v921_v37, %v927_v1 }
 0xac1   :  { %v900_v14 = vpop.xlane.xlu2 %899 }
 0xac2   :  { %v922_v32 = vperm.slane %v900_v14, %v1736_v19 }
 0xac4   :  { %v929_v57 = vsel %vm315_vm3, %v922_v32, %v928_v36 }
 0xac5   :  { %v930_v39 = vsel %vm389_vm5, %v923_v26, %v929_v57 }
 0xac6   :  { %v931_v45 = vsel %vm2050_vm14, %v924_v42, %v930_v39 }
 0xac9   :  { %v909_v43 = vpop.xlane.xlu2 %908 }
 0xaca   :  { %v925_v44 = vperm.slane %v909_v43, %v1736_v19 }
 0xacc   :  { %v932_v46 = vsel %vm2051_vm0, %v925_v44, %v931_v45 }
 0xacd   :  { %v935_v47 = vsel %vm934_vm9, %v932_v46, -inf }
 0xace   :  { %936 = vmax.xlane.f32.xlu0 %v935_v47 }
 0xb41   :  { %v937_v41 = vpop.xlane.xlu0 %936 }
 0xb42   :  { %v941_v48 = vperm.slane %v937_v41, 2  ;;  %v940_v49 = vperm.slane %v937_v41, 1  ;;  %v939_v50 = vperm.slane %v937_v41, 0  ;;  %v943_v54 = vperm.slane %v937_v41, 4 }
 0xb43   :  { %v942_v55 = vperm.slane %v937_v41, 3  ;;  %v945_v27 = vperm.slane %v937_v41, 6  ;;  %v944_v8 = vperm.slane %v937_v41, 5  ;;  %v946_v16 = vperm.slane %v937_v41, 7 }
 0xb44   :  { %v957_v52 = vsub.f32 %v894_v33, %v941_v48  ;;  %v956_v53 = vsub.f32 %v891_v28, %v940_v49  ;;  %v955_v0 = vsub.f32 %v888_v23, %v939_v50  ;;  %v959_v62 = vsub.f32 %v900_v14, %v943_v54 }
 0xb45   :  { %v958_v63 = vsub.f32 %v897_v29, %v942_v55  ;;  %v961_v11 = vsub.f32 %v906_v38, %v945_v27  ;;  %v960_v12 = vsub.f32 %v903_v35, %v944_v8  ;;  %v962_v20 = vsub.f32 %v909_v43, %v946_v16 }
 0xb46   :  { %v967_v59 = vmul.f32 1.442695, %v957_v52  ;;  %v965_v56 = vmul.f32 1.442695, %v956_v53  ;;  %v963_v60 = vmul.f32 1.442695, %v955_v0 }
 0xb47   :  { %v971_v2 = vmul.f32 1.442695, %v959_v62  ;;  %v969_v7 = vmul.f32 1.442695, %v958_v63  ;;  %v975_v61 = vmul.f32 1.442695, %v961_v11 }
 0xb48   :  { %1410 = vpow2.f32 %v967_v59  ;;  %v973_v15 = vmul.f32 1.442695, %v960_v12  ;;  %v977_v51 = vmul.f32 1.442695, %v962_v20 }
 0xb49   :  { %1412 = vpow2.f32 %v965_v56 }
 0xb4a   :  { %1414 = vpow2.f32 %v963_v60 }
 0xb4b   :  { %1416 = vpow2.f32 %v971_v2 }
 0xb4c   :  { %1418 = vpow2.f32 %v969_v7 }
 0xb4d   :  { %1420 = vpow2.f32 %v975_v61 }
 0xb4e   :  { %v1873_v5 = vpop.eup %1410  ;;  %1422 = vpow2.f32 %v973_v15 }
 0xb4f   :  { %v1875_v9 = vpop.eup %1412  ;;  %994 = vperm.xlu0 %1339, %v1873_v5   ;;  %1424 = vpow2.f32 %v977_v51 }
 0xb50   :  { %v1878_v10 = vpop.eup %1414  ;;  %991 = vperm.xlu2 %1338, %v1875_v9  }
 0xb51   :  { %988 = vperm.xlu1 %1337, %v1878_v10   ;;  %v1882_v17 = vpop.eup %1416 }
 0xb52   :  { %v1884_v18 = vpop.eup %1418 }
 0xb53   :  { %v1888_v4 = vpop.eup %1420 }
 0xb54   :  { %v1890_v3 = vpop.eup %1422 }
 0xb55   :  { %v1894_v21 = vpop.eup %1424 }
 0xb58   :  { %1000 = vperm.xlu2 %1338, %v1882_v17  }
 0xb59   :  { %997 = vperm.xlu1 %1337, %v1884_v18  }
 0xb60   :  { %1006 = vperm.xlu2 %1338, %v1888_v4  }
 0xb61   :  { %1003 = vperm.xlu1 %1337, %v1890_v3  }
 0xb69   :  { %1009 = vperm.xlu1 %1337, %v1894_v21  }
 0xbaa   :  { %v992_v22 = vpop.permute.xlu2 %991 }
 0xbab   :  { %v1012_v33 = vperm.slane %v992_v22, %v1736_v19 }
 0xbb2   :  { %v1001_v28 = vpop.permute.xlu2 %1000 }
 0xbb3   :  { %v1015_v35 = vperm.slane %v1001_v28, %v1736_v19 }
 0xbba   :  { %v1007_v36 = vpop.permute.xlu2 %1006 }
 0xbbb   :  { %v1017_v26 = vperm.slane %v1007_v36, %v1736_v19 }
 0xbc1   :  { %v995_v29 = vpop.permute.xlu0 %994 }
 0xbc2   :  { %v1013_v24 = vperm.slane %v995_v29, %v1736_v19 }
 0xbc3   :  { %v989_v6 = vpop.permute.xlu1 %988 }
 0xbc4   :  { %v1011_v25 = vperm.slane %v989_v6, %v1736_v19 }
 0xbc6   :  { %v1019_v30 = vsel %vm105_vm1, %v1012_v33, %v1011_v25  ;;  %vm2052_vm1 = vmmov %vm2050_vm14 }
 0xbc7   :  { %v1020_v14 = vsel %vm165_vm2, %v1013_v24, %v1019_v30 }
 0xbcb   :  { %v998_v23 = vpop.permute.xlu1 %997 }
 0xbcc   :  { %v1014_v31 = vperm.slane %v998_v23, %v1736_v19 }
 0xbce   :  { %v1021_v32 = vsel %vm240_vm4, %v1014_v31, %v1020_v14 }
 0xbcf   :  { %v1022_v57 = vsel %vm315_vm3, %v1015_v35, %v1021_v32 }
 0xbd3   :  { %v1004_v37 = vpop.permute.xlu1 %1003 }
 0xbd4   :  { %v1016_v1 = vperm.slane %v1004_v37, %v1736_v19 }
 0xbd6   :  { %v1023_v38 = vsel %vm389_vm5, %v1016_v1, %v1022_v57 }
 0xbd7   :  { %v1024_v43 = vsel %vm2052_vm1, %v1017_v26, %v1023_v38 }
 0xbdb   :  { %v1010_v39 = vpop.permute.xlu1 %1009 }
 0xbdc   :  { %v1018_v42 = vperm.slane %v1010_v39, %v1736_v19 }
 0xbde   :  { %v1025_v44 = vsel %vm2053_vm8, %v1018_v42, %v1024_v43 }
 0xbdf   :  { %v1027_v45 = vsel %vm934_vm9, %v1025_v44, 0.0 }
 0xbe0   :  { %1028 = vadd.xlane.f32.xlu2 %v1027_v45 }
 0xc53   :  { %v1029_v46 = vpop.xlane.xlu2 %1028 }
 0xc54   :  { %v1031_v47 = vperm.slane %v1029_v46, 0  ;;  %v1032_v40 = vperm.slane %v1029_v46, 1  ;;  %v1913_v41 = vperm.slane %v1029_v46, 2  ;;  %v1915_v48 = vperm.slane %v1029_v46, 3 }
 0xc55   :  { %v1917_v49 = vperm.slane %v1029_v46, 4  ;;  %v1919_v50 = vperm.slane %v1029_v46, 5  ;;  %v1925_v54 = vperm.slane %v1029_v46, 7  ;;  %v1927_v56 = vperm.slane %v1029_v46, 6 }
 0xc56   :  { %1426 = vrcp.f32 %v1031_v47  ;;  %v1071_v19 = vand.u32 2147483647, %v1032_v40  ;;  %v1073_v52 = vand.u32 2147483648, %v1032_v40  ;;  %v1056_v53 = vand.u32 2147483647, %v1031_v47 }
 0xc57   :  { %1428 = vrcp.f32 %v1032_v40  ;;  %v1058_v55 = vand.u32 2147483648, %v1031_v47  ;;  %vm1067_vm2 = vweird.f32 %v1032_v40  ;;  %vm1052_vm4 = vweird.f32 %v1031_v47 }
 0xc58   :  { %1430 = vrcp.f32 %v1913_v41  ;;  %vm1931_vm3 = vcmp.eq.f32.partialorder %v1071_v19, 8.507059e+37  ;;  %v1074_v7 = vor.u32 1.1754944e-38, %v1073_v52  ;;  %vm1937_vm5 = vcmp.eq.f32.partialorder %v1056_v53, 8.507059e+37 }
 0xc59   :  { %1432 = vrcp.f32 %v1915_v48  ;;  %v1059_v16 = vor.u32 1.1754944e-38, %v1058_v55  ;;  %v1103_v24 = vand.u32 2147483648, %v1915_v48  ;;  %v1088_v31 = vand.u32 2147483648, %v1913_v41 }
 0xc5a   :  { %1434 = vrcp.f32 %v1917_v49  ;;  %vm1082_vm9 = vweird.f32 %v1913_v41  ;;  %v1086_v44 = vand.u32 2147483647, %v1913_v41  ;;  %vm1097_vm14 = vweird.f32 %v1915_v48 }
 0xc5b   :  { %1436 = vrcp.f32 %v1919_v50  ;;  %v1101_v46 = vand.u32 2147483647, %v1915_v48  ;;  %v1104_v52 = vor.u32 1.1754944e-38, %v1103_v24 }
 0xc5c   :  { %v1427_v0 = vpop.eup %1426  ;;  %1438 = vrcp.f32 %v1925_v54  ;;  %vm1087_vm8 = vcmp.eq.f32.partialorder %v1086_v44, 8.507059e+37 }
 0xc5d   :  { %v1429_v59 = vpop.eup %1428  ;;  %v1048_v60 = vmul.f32 %v1427_v0, %v1031_v47  ;;  %vm1053_vm10 = vweird.f32 %v1427_v0  ;;  %1440 = vrcp.f32 %v1927_v56 }
 0xc5e   :  { %v1929_v62 = vpop.eup %1430  ;;  %v1063_v63 = vmul.f32 %v1429_v59, %v1032_v40  ;;  %vm1068_vm11 = vweird.f32 %v1429_v59  ;;  %vm1054_vm12 = vmor %vm1052_vm4, %vm1053_vm10  ;;  %vm1127_vm10 = vweird.f32 %v1919_v50 }
 0xc5f   :  { %v1935_v27 = vpop.eup %1432  ;;  %v1049_v8 = vsub.f32 1.0, %v1048_v60  ;;  %v1078_v12 = vmul.f32 %v1929_v62, %v1913_v41  ;;  %vm1083_vm13 = vweird.f32 %v1929_v62  ;;  %vm1069_vm6 = vmor %vm1067_vm2, %vm1068_vm11  ;;  %v1089_v41 = vor.u32 1.1754944e-38, %v1088_v31 }
 0xc60   :  { %v1943_v61 = vpop.eup %1434  ;;  %v1064_v15 = vsub.f32 1.0, %v1063_v63  ;;  %v1093_v20 = vmul.f32 %v1935_v27, %v1915_v48  ;;  %vm1098_vm7 = vweird.f32 %v1935_v27  ;;  %vm1084_vm0 = vmor %vm1082_vm9, %vm1083_vm13  ;;  %vm1102_vm2 = vcmp.eq.f32.partialorder %v1101_v46, 8.507059e+37 }
 0xc61   :  { %v1948_v51 = vpop.eup %1436  ;;  %v1050_v6 = vmul.f32 %v1427_v0, %v1049_v8  ;;  %v1079_v22 = vsub.f32 1.0, %v1078_v12  ;;  %v1108_v23 = vmul.f32 %v1943_v61, %v1917_v49  ;;  %vm1099_vm1 = vmor %vm1097_vm14, %vm1098_vm7  ;;  %v1118_v63 = vand.u32 2147483648, %v1917_v49 }
 0xc62   :  { %v1065_v28 = vmul.f32 %v1429_v59, %v1064_v15  ;;  %v1094_v29 = vsub.f32 1.0, %v1093_v20  ;;  %v1123_v25 = vmul.f32 %v1948_v51, %v1919_v50  ;;  %v1964_v36 = vpop.eup %1438  ;;  %vm1128_vm4 = vweird.f32 %v1948_v51 }
 0xc63   :  { %v1051_v33 = vadd.f32 %v1427_v0, %v1050_v6  ;;  %v1080_v30 = vmul.f32 %v1929_v62, %v1079_v22  ;;  %v1109_v35 = vsub.f32 1.0, %v1108_v23  ;;  %v1983_v40 = vpop.eup %1440  ;;  %v1153_v48 = vmul.f32 %v1964_v36, %v1925_v54 }
 0xc64   :  { %v1066_v37 = vadd.f32 %v1429_v59, %v1065_v28  ;;  %v1095_v14 = vmul.f32 %v1935_v27, %v1094_v29  ;;  %v1124_v39 = vsub.f32 1.0, %v1123_v25  ;;  %v1138_v60 = vmul.f32 %v1983_v40, %v1927_v56 }
 0xc65   :  { %v1055_v32 = vsel %vm1054_vm12, %v1427_v0, %v1051_v33  ;;  %v1081_v1 = vadd.f32 %v1929_v62, %v1080_v30  ;;  %v1133_v0 = vand.u32 2147483648, %v1919_v50  ;;  %v1154_v2 = vsub.f32 1.0, %v1153_v48  ;;  %vm1129_vm12 = vmor %vm1127_vm10, %vm1128_vm4 }
 0xc66   :  { %v1070_v57 = vsel %vm1069_vm6, %v1429_v59, %v1066_v37  ;;  %v1060_v38 = vsel %vm1937_vm5, %v1059_v16, %v1055_v32  ;;  %v1096_v26 = vadd.f32 %v1935_v27, %v1095_v14  ;;  %v1125_v19 = vmul.f32 %v1948_v51, %v1124_v39  ;;  %v62_v32 = vld [vmem:[#allocation2 + $0x110] sm:$0xff] }
 0xc67   :  { %v1075_v42 = vsel %vm1931_vm3, %v1074_v7, %v1070_v57  ;;  %v1061_v43 = vmul.f32 %v1878_v10, %v1060_v38  ;;  %v1085_v47 = vsel %vm1084_vm0, %v1929_v62, %v1081_v1  ;;  %v1110_v10 = vmul.f32 %v1943_v61, %v1109_v35  ;;  %v61_v1 = vld [vmem:[#allocation2 + $0x108] sm:$0xff]  ;;  %v60_v57 = vld [vmem:[#allocation2 + $0x100] sm:$0xff]  ;;  %v66_v38 = vld [vmem:[#allocation2 + $0x130] sm:$0xff] }
 0xc68   :  { %v1076_v45 = vmul.f32 %v1875_v9, %v1075_v42  ;;  %v1100_v9 = vsel %vm1099_vm1, %v1935_v27, %v1096_v26  ;;  %v1090_v53 = vsel %vm1087_vm8, %v1089_v41, %v1085_v47  ;;  %vm1113_vm3 = vweird.f32 %v1943_v61 }
 0xc69   :  { %1180 = vperm.xlu0 %1339, %v1061_v43   ;;  %v1105_v55 = vsel %vm1102_vm2, %v1104_v52, %v1100_v9  ;;  %v1111_v59 = vadd.f32 %v1943_v61, %v1110_v10  ;;  %v1126_v62 = vadd.f32 %v1948_v51, %v1125_v19  ;;  %v1091_v27 = vmul.f32 %v1873_v5, %v1090_v53 }
 0xc6a   :  { %1185 = vperm.xlu1 %1337, %v1076_v45   ;;  %vm1112_vm5 = vweird.f32 %v1917_v49  ;;  %v1116_v7 = vand.u32 2147483647, %v1917_v49  ;;  %v1139_v8 = vsub.f32 1.0, %v1138_v60  ;;  %v1106_v11 = vmul.f32 %v1884_v18, %v1105_v55 }
 0xc6b   :  { %v1131_v12 = vand.u32 2147483647, %v1919_v50  ;;  %vm1114_vm11 = vmor %vm1112_vm5, %vm1113_vm3  ;;  %v1130_v5 = vsel %vm1129_vm12, %v1948_v51, %v1126_v62  ;;  %v1119_v20 = vor.u32 1.1754944e-38, %v1118_v63  ;;  %v1155_v49 = vmul.f32 %v1964_v36, %v1154_v2 }
 0xc6c   :  { %v1115_v15 = vsel %vm1114_vm11, %v1943_v61, %v1111_v59  ;;  %v1140_v16 = vmul.f32 %v1983_v40, %v1139_v8  ;;  %v1134_v6 = vor.u32 1.1754944e-38, %v1133_v0  ;;  %vm1117_vm13 = vcmp.eq.f32.partialorder %v1116_v7, 8.507059e+37 }
 0xc6d   :  { %vm1132_vm6 = vcmp.eq.f32.partialorder %v1131_v12, 8.507059e+37  ;;  %v1120_v18 = vsel %vm1117_vm13, %v1119_v20, %v1115_v15  ;;  %vm1143_vm7 = vweird.f32 %v1983_v40  ;;  %v1156_v23 = vadd.f32 %v1964_v36, %v1155_v49  ;;  %v65_v49 = vld [vmem:[#allocation2 + $0x128] sm:$0xff] }
 0xc6e   :  { %v1135_v22 = vsel %vm1132_vm6, %v1134_v6, %v1130_v5  ;;  %v1141_v50 = vadd.f32 %v1983_v40, %v1140_v16  ;;  %vm1158_vm9 = vweird.f32 %v1964_v36  ;;  %v1148_v61 = vand.u32 2147483648, %v1927_v56  ;;  %v64_v6 = vld [vmem:[#allocation2 + $0x120] sm:$0xff] }
 0xc6f   :  { %v1121_v51 = vmul.f32 %v1882_v17, %v1120_v18  ;;  %v1163_v28 = vand.u32 2147483648, %v1925_v54  ;;  %vm1142_vm14 = vweird.f32 %v1927_v56  ;;  %v1146_v29 = vand.u32 2147483647, %v1927_v56  ;;  %v1442_v18 = vld [vmem:[#allocation2 + $0x140] sm:$0xff] }
 0xc70   :  { %v1136_v25 = vmul.f32 %v1890_v3, %v1135_v22  ;;  %vm1157_vm0 = vweird.f32 %v1925_v54  ;;  %v1161_v33 = vand.u32 2147483647, %v1925_v54  ;;  %vm1144_vm1 = vmor %vm1142_vm14, %vm1143_vm7  ;;  %v1149_v30 = vor.u32 1.1754944e-38, %v1148_v61  ;;  %v63_v54 = vld [vmem:[#allocation2 + $0x118] sm:$0xff] }
 0xc71   :  { %1190 = vperm.xlu0 %1339, %v1091_v27   ;;  %vm1159_vm8 = vmor %vm1157_vm0, %vm1158_vm9  ;;  %v1145_v24 = vsel %vm1144_vm1, %v1983_v40, %v1141_v50  ;;  %v1164_v31 = vor.u32 1.1754944e-38, %v1163_v28  ;;  %vm1147_vm2 = vcmp.eq.f32.partialorder %v1146_v29, 8.507059e+37  ;;  %1258 = vmatpush.msra.mxu3 %v63_v54  ;;  %v1168_v42 = vrot.slane %v1837_v13, 4 }
 0xc72   :  { %1195 = vperm.xlu1 %1337, %v1106_v11   ;;  %v1160_v17 = vsel %vm1159_vm8, %v1964_v36, %v1156_v23  ;;  %vm1162_vm3 = vcmp.eq.f32.partialorder %v1161_v33, 8.507059e+37  ;;  %v1150_v37 = vsel %vm1147_vm2, %v1149_v30, %v1145_v24  ;;  %v67_v36 = vld [vmem:[#allocation2 + $0x138] sm:$0xff]  ;;  %vm1226_vm4 = vcmask 254976  }
 0xc73   :  { %v1165_v56 = vsel %vm1162_vm3, %v1164_v31, %v1160_v17  ;;  %v1151_v3 = vmul.f32 %v1888_v4, %v1150_v37  ;;  %1259 = vmatpush.msra.mxu3 %v62_v32  ;;  %1283 = vmatpush.msrb.mxu2 %v67_v36  ;;  %v1167_v4 = vrot.slane %v1837_v13, 2  ;;  %v1169_v10 = vrot.slane %v1837_v13, 6 }
 0xc74   :  { %v1166_v14 = vmul.f32 %v1894_v21, %v1165_v56  ;;  %v1170_v55 = vrot.slane %v1835_v58, 2  ;;  %v1242_v22 = vperm.slane %v1442_v18, 3  ;;  %vm1291_vm5 = vcmask 9216  }
 0xc75   :  { %1260 = vmatpush.msra.mxu3 %v61_v1  ;;  %1284 = vmatpush.msrb.mxu2 %v66_v38 }
 0xc77   :  { %1261 = vmatpush.msra.mxu3 %v60_v57  ;;  %1285 = vmatpush.msrb.mxu2 %v65_v49 }
 0xc79   :  { %1200 = vperm.xlu0 %1339, %v1121_v51   ;;  %1286 = vmatpush.msrb.mxu2 %v64_v6 }
 0xc7a   :  { %1205 = vperm.xlu1 %1337, %v1136_v25  }
 0xc81   :  { %1210 = vperm.xlu0 %1339, %v1151_v3  }
 0xc82   :  { %1215 = vperm.xlu1 %1337, %v1166_v14  }
 0xcdb   :  { %v1181_v35 = vpop.permute.xlu0 %1180 }
 0xcdc   :  { %v1186_v26 = vpop.permute.xlu1 %1185  ;;  %v1218_v21 = vmul.f32 %v1181_v35, %v1837_v13  ;;  %v1171_v13 = vrot.slane %v1835_v58, 4 }
 0xcdd   :  { %v1219_v39 = vmul.f32 %v1186_v26, %v1167_v4 }
 0xcde   :  { %v1227_v47 = vsel %vm1226_vm4, %v1218_v21, 0.0 }
 0xcdf   :  { %v1228_v46 = vsel %vm1226_vm4, %v1219_v39, 0.0 }
 0xce0   :  { %v1229_v9 = vadd.f32 %v1228_v46, %v1227_v47 }
 0xce3   :  { %v1191_v43 = vpop.permute.xlu0 %1190 }
 0xce4   :  { %v1196_v44 = vpop.permute.xlu1 %1195  ;;  %v1220_v45 = vmul.f32 %v1191_v43, %v1168_v42 }
 0xce5   :  { %v1221_v41 = vmul.f32 %v1196_v44, %v1169_v10 }
 0xce6   :  { %v1230_v40 = vsel %vm1226_vm4, %v1220_v45, 0.0 }
 0xce7   :  { %v1231_v19 = vadd.f32 %v1230_v40, %v1229_v9  ;;  %v1232_v0 = vsel %vm1226_vm4, %v1221_v41, 0.0 }
 0xce9   :  { %v1233_v60 = vadd.f32 %v1232_v0, %v1231_v19 }
 0xceb   :  { %v1201_v48 = vpop.permute.xlu0 %1200 }
 0xcec   :  { %v1206_v52 = vpop.permute.xlu1 %1205  ;;  %v1222_v53 = vmul.f32 %v1201_v48, %v1835_v58  ;;  %v1267_v58 = vperm.slane %v1442_v18, 4 }
 0xced   :  { %v1223_v62 = vmul.f32 %v1206_v52, %v1170_v55 }
 0xcee   :  { %v1234_v59 = vsel %vm1226_vm4, %v1222_v53, 0.0 }
 0xcef   :  { %v1235_v63 = vadd.f32 %v1234_v59, %v1233_v60  ;;  %v1236_v27 = vsel %vm1226_vm4, %v1223_v62, 0.0 }
 0xcf1   :  { %v1237_v12 = vadd.f32 %v1236_v27, %v1235_v63 }
 0xcf3   :  { %v1211_v2 = vpop.permute.xlu0 %1210 }
 0xcf4   :  { %v1216_v7 = vpop.permute.xlu1 %1215  ;;  %v1224_v8 = vmul.f32 %v1211_v2, %v1171_v13 }
 0xcf5   :  { %v1225_v11 = vmul.f32 %v1216_v7, %v815_v34 }
 0xcf6   :  { %v1238_v15 = vsel %vm1226_vm4, %v1224_v8, 0.0 }
 0xcf7   :  { %v1239_v16 = vadd.f32 %v1238_v15, %v1237_v12  ;;  %v1240_v5 = vsel %vm1226_vm4, %v1225_v11, 0.0 }
 0xcf9   :  { %v1241_v20 = vadd.f32 %v1240_v5, %v1239_v16 }
 0xcfb   :  { %1326 = vmatmul.msk.f32.vlgmr.msra.gmra.mxu3 %vm785_vm15, %v1241_v20 }
 0xd7e   :  { %v1263_v50 = vpop.f32.mrf.mxu3 }
 0xd7f   :  { %v1264_v23 = vadd.f32 %v1263_v50, %v1242_v22 }
 0xd81   :  { %v1266_v61 = vmax.f32 %v1264_v23, 0.0 }
 0xd83   :  { %1327 = vmatmul.msk.f32.vlgmr.msrb.gmra.mxu2 %vm785_vm15, %v1266_v61 }
 0xe06   :  { %v1288_v34 = vpop.f32.mrf.mxu2 }
 0xe07   :  { %v1289_v51 = vadd.f32 %v1288_v34, %v1267_v58 }
 0xe09   :  { %1292 = vst.msk [vmem:[#allocation5] sm:$0x3] %vm1291_vm5, %v1289_v51 }
 0xe0a   :  { %1303 = dma.vmem_to_hbm [thread:$0]  %s1299_s22, 32, %s1301_s25, [#allocation4]  }
 0xe0b   :  { %1493 = dma.done.wait [#allocation4], 32  }
 0xe0c   :  { %1494 = vsyncadd [#allocation4], 4294967264 }
 0xe0d   :  { %1308 = vsyncpa [#allocation3], 1 }
 0xe0e   :  { %1309 = vsyncpa [#allocation4], 1 }

</bundles_post_ra>
